<compile_context>
chip_gen: v7x
topology: tpu7x:2x2x1
jax: 0.10.0
libtpu: 0.0.40
codegen_flags: <defaults>
</compile_context>

<pallas_src>
import functools

import jax
import jax.numpy as jnp
import numpy as np
from jax.experimental import pallas as pl
from jax.experimental.pallas import tpu as pltpu


def _rcb_kernel(
    x_ref,      # (Bb*T, C)        input slab (read at flow 0 only)
    m_ref,      # (Bb*T, 1)        time mask (f32)
    prew_ref,   # (1, half, H)     pre 1x1 conv weight  (bf16, Flip-absorbed)
    preb_ref,   # (1, 1, H)        pre bias             (f32)
    wg_ref,     # (1, L*K, H, 2H)  fused in_layer taps [tanh || sigmoid] (bf16)
    bg_ref,     # (1, L, 1, 2H)    fused in_layer bias  (f32)
    wrs_ref,    # (1, L, H, 2H)    fused [res || skip] weights (bf16; res of
                #                  the last layer is unused, matching WN)
    brs_ref,    # (1, L, 1, 2H)    fused [res || skip] bias (f32)
    postw_ref,  # (1, H, half)     post 1x1 conv weight (bf16, Flip-absorbed)
    postb_ref,  # (1, 1, half)     post bias            (f32, Flip-absorbed)
    o_ref,      # (Bb*T, C)        output slab (written on the last flow only)
    s_ref,      # scratch (Bb*T, C) f32   carried coupling state (canonical frame)
    pad_ref,    # scratch (Bb, T+2*pad_max, H) bf16   zero-halo conv buffer
    *,
    kernel_size: int,
    dilation_rate: int,
    n_layers: int,
    n_flows: int,
    pad_max: int,
    half: int,
    block_b: int,
    seq_len: int,
):
    f = pl.program_id(1)
    K, L = kernel_size, n_layers
    Bb, T = block_b, seq_len
    BT = Bb * T
    H = pad_ref.shape[2]

    mask = m_ref[...]                                   # (BT, 1) f32

    # First flow of this batch block: load carried state, zero the conv halos
    # once (interior rows are rewritten every layer; halo rows stay zero).
    @pl.when(f == 0)
    def _():
        s_ref[...] = x_ref[...].astype(jnp.float32)
        if pad_max > 0:
            z = jnp.zeros((Bb, pad_max, H), jnp.bfloat16)
            pad_ref[:, pl.ds(0, pad_max), :] = z
            pad_ref[:, pl.ds(pad_max + T, pad_max), :] = z

    s = s_ref[...]                                      # (BT, C) f32
    p = s[:, :half]
    q = s[:, half:]

    # ---- ResidualCouplingLayer (mean_only=True) ----------------------------
    # pre: 1x1 conv half -> H, masked
    h = (jnp.dot(p.astype(jnp.bfloat16), prew_ref[0],
                 preferred_element_type=jnp.float32) + preb_ref[0]) * mask

    # WN: n_layers of dilated gated convs (g=None; dropout p=0 -> identity)
    skip_acc = jnp.zeros((BT, H), jnp.float32)
    x_cur = h
    for l in range(L):
        d = dilation_rate ** l
        pad_l = d * (K - 1) // 2
        # interior rows only; per-batch halos prevent cross-batch conv bleed
        pad_ref[:, pl.ds(pad_max, T), :] = (
            x_cur.astype(jnp.bfloat16).reshape(Bb, T, H))
        acc = None                                       # (BT, 2H) f32
        for k in range(K):
            off = pad_max - pad_l + k * d                # static offset
            tap = pad_ref[:, pl.ds(off, T), :].reshape(BT, H)   # bf16
            part = jnp.dot(tap, wg_ref[0, l * K + k],
                           preferred_element_type=jnp.float32)
            acc = part if acc is None else acc + part
        acc = acc + bg_ref[0, l]                         # fused bias, one add
        acts = jnp.tanh(acc[:, :H]) * jax.nn.sigmoid(acc[:, H:])   # (BT, H)
        rs = jnp.dot(acts.astype(jnp.bfloat16), wrs_ref[0, l],
                     preferred_element_type=jnp.float32) + brs_ref[0, l]
        if l < L - 1:
            x_cur = (x_cur + rs[:, :H]) * mask
        skip_acc = skip_acc + rs[:, H:]
    wn_out = skip_acc * mask

    # post: 1x1 conv H -> half, masked => m ; logs == 0 because mean_only=True
    m_stats = (jnp.dot(wn_out.astype(jnp.bfloat16), postw_ref[0],
                       preferred_element_type=jnp.float32) + postb_ref[0]) * mask

    new_p = m_stats + q * mask     # x1 <- m + x1 * exp(0) * mask
    new_q = p                      # x0 passes through (Flip absorbed in weights)
    new_s = jnp.concatenate([new_p, new_q], axis=-1)     # (BT, C)
    s_ref[...] = new_s

    @pl.when(f == n_flows - 1)
    def _():
        o_ref[...] = new_s.astype(o_ref.dtype)           # single lane-dense store


def _default_vmem_limit_bytes():
    cap = None
    try:
        cap = getattr(pltpu.get_tpu_info(), "vmem_capacity_bytes", None)
    except Exception:
        cap = None
    if not cap:
        cap = 64 * 1024 * 1024            # conservative (v7x physical VMEM)
    return int(min(100 * 1024 * 1024, (cap * 3) // 4))


def prepare_flow_params(flows, weight_dtype=jnp.bfloat16):
    """Load-time preprocessing: stack per-flow params, absorb Flip layers into
    channel permutations of odd flows' 1x1 convs, fuse tanh/sigmoid and
    res/skip matmuls into wide-N weights, and cast streamed weights to bf16.
    Weight-norm is assumed already folded; conv weights are channels-last
    (in, out) / (layers, taps, in, out)."""
    F = len(flows)
    L, K, H, _ = flows[0]["wt"].shape
    half = flows[0]["pre_w"].shape[0]

    def stk(key):
        return jnp.stack([fp[key] for fp in flows], axis=0)

    pre_w = jnp.stack([fp["pre_w"][::-1] if (i % 2) else fp["pre_w"]
                       for i, fp in enumerate(flows)], axis=0)
    post_w = jnp.stack([fp["post_w"][:, ::-1] if (i % 2) else fp["post_w"]
                        for i, fp in enumerate(flows)], axis=0)
    post_b = jnp.stack([fp["post_b"][:, ::-1] if (i % 2) else fp["post_b"]
                        for i, fp in enumerate(flows)], axis=0)
    pre_b = stk("pre_b")

    wg = jnp.concatenate([stk("wt"), stk("ws")], axis=-1)     # (F,L,K,H,2H)
    wg = wg.reshape(F, L * K, H, 2 * H)
    bg = jnp.concatenate([stk("bt"), stk("bs")], axis=-1)     # (F,L,1,2H)
    wrs = jnp.concatenate([stk("res_w"), stk("skip_w")], axis=-1)
    brs = jnp.concatenate([stk("res_b"), stk("skip_b")], axis=-1)

    wd = weight_dtype
    return {
        "n_flows": F, "n_layers": L, "kernel_size": K, "hidden": H, "half": half,
        "pre_w": pre_w.astype(wd), "pre_b": pre_b.astype(jnp.float32),
        "wg": wg.astype(wd), "bg": bg.astype(jnp.float32),
        "wrs": wrs.astype(wd), "brs": brs.astype(jnp.float32),
        "post_w": post_w.astype(wd), "post_b": post_b.astype(jnp.float32),
    }


def residual_coupling_block(x, x_mask, params, *, dilation_rate,
                            block_b=None, vmem_limit_bytes=None):
    """x: (B, C, T), x_mask: (B, 1, T) -> (B, C, T)."""
    B, C, T = x.shape
    F = params["n_flows"]
    L = params["n_layers"]
    K = params["kernel_size"]
    H = params["hidden"]
    half = params["half"]
    assert C == 2 * half, "channels must be even and match params"
    assert K % 2 == 1, "WN requires odd kernel_size"
    pad_max = (dilation_rate ** (L - 1)) * (K - 1) // 2

    if block_b is None:
        if B <= 2:
            block_b = 1
        else:  # amortize weight DMA, but keep >=2 parallel batch blocks (v7x)
            block_b = max(d for d in range(1, B // 2 + 1) if B % d == 0)
    assert B % block_b == 0
    Bb = block_b
    assert (Bb * T) % 8 == 0 or Bb == B, "block_b * T should be a multiple of 8"

    if vmem_limit_bytes is None:
        vmem_limit_bytes = _default_vmem_limit_bytes()

    xt = jnp.transpose(x, (0, 2, 1)).reshape(B * T, C)        # lane-dense slab
    mt = jnp.transpose(x_mask, (0, 2, 1)).reshape(B * T, 1).astype(jnp.float32)

    def data_spec(last):
        return pl.BlockSpec((Bb * T, last), lambda b, f: (b, 0))

    def flow_spec(shape):
        nd = len(shape)
        return pl.BlockSpec((1,) + tuple(shape[1:]),
                            lambda b, f, _nd=nd: (f,) + (0,) * (_nd - 1))

    kern = functools.partial(
        _rcb_kernel, kernel_size=K, dilation_rate=dilation_rate, n_layers=L,
        n_flows=F, pad_max=pad_max, half=half, block_b=Bb, seq_len=T)

    out_flat = pl.pallas_call(
        kern,
        out_shape=jax.ShapeDtypeStruct((B * T, C), x.dtype),
        grid_spec=pltpu.PrefetchScalarGridSpec(
            num_scalar_prefetch=0,
            grid=(B // Bb, F),
            in_specs=[
                data_spec(C), data_spec(1),
                flow_spec(params["pre_w"].shape), flow_spec(params["pre_b"].shape),
                flow_spec(params["wg"].shape), flow_spec(params["bg"].shape),
                flow_spec(params["wrs"].shape), flow_spec(params["brs"].shape),
                flow_spec(params["post_w"].shape), flow_spec(params["post_b"].shape),
            ],
            out_specs=data_spec(C),
            scratch_shapes=[
                pltpu.VMEM((Bb * T, C), jnp.float32),
                pltpu.VMEM((Bb, T + 2 * pad_max, H), jnp.bfloat16),
            ],
        ),
        compiler_params=pltpu.CompilerParams(
            dimension_semantics=("parallel", "arbitrary"),
            vmem_limit_bytes=int(vmem_limit_bytes)),
    )(xt, mt, params["pre_w"], params["pre_b"], params["wg"], params["bg"],
      params["wrs"], params["brs"], params["post_w"], params["post_b"])

    out = out_flat.reshape(B, T, C)
    if F % 2 == 1:
        # odd number of flows: undo the remaining per-half channel reversal
        out = jnp.concatenate([out[..., :half][..., ::-1],
                               out[..., half:][..., ::-1]], axis=-1)
    # TODO(synk): optional g conditioning (gin_channels>0) and reverse=True
    # path are not implemented (module is used here with g=None, forward).
    return jnp.transpose(out, (0, 2, 1))                      # back to (B, C, T)


# ----------------------------- pure-JAX reference ---------------------------
_HI = jax.lax.Precision.HIGHEST


def _ref_wn(h, mask, fp, *, kernel_size, dilation_rate, n_layers):
    B, T, H = h.shape
    K = kernel_size
    out = jnp.zeros_like(h)
    x = h
    for l in range(n_layers):
        d = dilation_rate ** l
        pad = d * (K - 1) // 2
        xp = jnp.pad(x, ((0, 0), (pad, pad), (0, 0)))
        acc_t = jnp.zeros((B, T, H), jnp.float32) + fp["bt"][l]
        acc_s = jnp.zeros((B, T, H), jnp.float32) + fp["bs"][l]
        for k in range(K):
            tap = xp[:, k * d:k * d + T, :]
            acc_t = acc_t + jnp.einsum("bti,io->bto", tap, fp["wt"][l, k],
                                       precision=_HI)
            acc_s = acc_s + jnp.einsum("bti,io->bto", tap, fp["ws"][l, k],
                                       precision=_HI)
        acts = jnp.tanh(acc_t) * jax.nn.sigmoid(acc_s)
        if l < n_layers - 1:
            res = jnp.einsum("bti,io->bto", acts, fp["res_w"][l],
                             precision=_HI) + fp["res_b"][l]
            x = (x + res) * mask
        out = out + jnp.einsum("bti,io->bto", acts, fp["skip_w"][l],
                               precision=_HI) + fp["skip_b"][l]
    return out * mask


def ref_forward(x, x_mask, flows, *, kernel_size, dilation_rate, n_layers):
    xt = jnp.transpose(x, (0, 2, 1))               # (B, T, C)
    mask = jnp.transpose(x_mask, (0, 2, 1))        # (B, T, 1)
    half = xt.shape[-1] // 2
    for fp in flows:
        x0 = xt[..., :half]
        x1 = xt[..., half:]
        h = (jnp.einsum("btc,ch->bth", x0, fp["pre_w"], precision=_HI)
             + fp["pre_b"]) * mask
        h = _ref_wn(h, mask, fp, kernel_size=kernel_size,
                    dilation_rate=dilation_rate, n_layers=n_layers)
        m = (jnp.einsum("bth,hc->btc", h, fp["post_w"], precision=_HI)
             + fp["post_b"]) * mask
        x1 = m + x1 * mask                         # logs == 0 (mean_only)
        xt = jnp.concatenate([x0, x1], axis=-1)
        xt = xt[..., ::-1]                         # modules.Flip
    return jnp.transpose(xt, (0, 2, 1))


if __name__ == "__main__":
    def make_flows(key, *, half, hidden, kernel_size, n_layers, n_flows,
                   scale=0.1):
        flows = []
        keys = jax.random.split(key, n_flows)
        for i in range(n_flows):
            fk = jax.random.split(keys[i], 12)

            def nrm(k, shape):
                return scale * jax.random.normal(k, shape, jnp.float32)

            flows.append({
                "pre_w":  nrm(fk[0], (half, hidden)),
                "pre_b":  nrm(fk[1], (1, hidden)),
                "wt":     nrm(fk[2], (n_layers, kernel_size, hidden, hidden)),
                "ws":     nrm(fk[3], (n_layers, kernel_size, hidden, hidden)),
                "bt":     nrm(fk[4], (n_layers, 1, hidden)),
                "bs":     nrm(fk[5], (n_layers, 1, hidden)),
                "res_w":  nrm(fk[6], (n_layers, hidden, hidden)),
                "res_b":  nrm(fk[7], (n_layers, 1, hidden)),
                "skip_w": nrm(fk[8], (n_layers, hidden, hidden)),
                "skip_b": nrm(fk[9], (n_layers, 1, hidden)),
                "post_w": nrm(fk[10], (hidden, half)),
                "post_b": nrm(fk[11], (1, half)),
            })
        return flows

    def run_case(seed, *, B, T, channels, hidden, kernel_size, dilation_rate,
                 n_layers, n_flows, block_b=None):
        half = channels // 2
        key = jax.random.PRNGKey(seed)
        kx, km, kf = jax.random.split(key, 3)
        x = jax.random.normal(kx, (B, channels, T), jnp.float32)
        lengths = jnp.clip(
            jnp.round(jax.random.uniform(km, (B,), minval=T // 2, maxval=T)),
            1, T).astype(jnp.int32)
        x_mask = (jnp.arange(T)[None, :] < lengths[:, None]
                  ).astype(jnp.float32)[:, None, :]
        flows = make_flows(kf, half=half, hidden=hidden,
                           kernel_size=kernel_size, n_layers=n_layers,
                           n_flows=n_flows)
        params = prepare_flow_params(flows)     # load-time: stack+fuse+bf16
        out = residual_coupling_block(x, x_mask, params,
                                      dilation_rate=dilation_rate,
                                      block_b=block_b)
        out = jax.block_until_ready(out)
        ref = ref_forward(x, x_mask, flows, kernel_size=kernel_size,
                          dilation_rate=dilation_rate, n_layers=n_layers)
        # bf16 weights/taps vs f32 HIGHEST reference -> loosened tolerance
        np.testing.assert_allclose(np.asarray(out), np.asarray(ref),
                                   rtol=2e-2, atol=2e-2)

    # even n_flows, dilation_rate=1, Bb=2 batch elements per grid step
    run_case(0, B=4, T=16, channels=8, hidden=32, kernel_size=5,
             dilation_rate=1, n_layers=4, n_flows=4)
    # odd n_flows + dilation_rate>1 (exercises odd-F fixup and dilated taps)
    run_case(1, B=2, T=16, channels=8, hidden=16, kernel_size=3,
             dilation_rate=2, n_layers=3, n_flows=3)

    print("KERNEL_OK")
</pallas_src>

<mosaic_0001>
module attributes {stable_mosaic.version = 11 : i64} {
  func.func @_rcb_kernel(%arg0: i32, %arg1: i32, %arg2: memref<32x8xf32, #tpu.memory_space<vmem>>, %arg3: memref<32x1xf32, #tpu.memory_space<vmem>>, %arg4: memref<1x4x32xbf16, #tpu.memory_space<vmem>>, %arg5: memref<1x1x32xf32, #tpu.memory_space<vmem>>, %arg6: memref<1x20x32x64xbf16, #tpu.memory_space<vmem>>, %arg7: memref<1x4x1x64xf32, #tpu.memory_space<vmem>>, %arg8: memref<1x4x32x64xbf16, #tpu.memory_space<vmem>>, %arg9: memref<1x4x1x64xf32, #tpu.memory_space<vmem>>, %arg10: memref<1x32x4xbf16, #tpu.memory_space<vmem>>, %arg11: memref<1x1x4xf32, #tpu.memory_space<vmem>>, %arg12: memref<32x8xf32, #tpu.memory_space<vmem>>, %arg13: memref<32x8xf32, #tpu.memory_space<vmem>>, %arg14: memref<2x20x32xbf16, #tpu.memory_space<vmem>>) attributes {dimension_semantics = [#tpu.dimension_semantics<parallel>, #tpu.dimension_semantics<arbitrary>], iteration_bounds = array<i64: 2, 4>, scalar_prefetch = 0 : i64, scratch_operands = 2 : i64, tpu.core_type = #tpu.core_type<tc>, window_params = [{transform_indices = @transform_0, window_bounds = array<i64: 32, 8>}, {transform_indices = @transform_1, window_bounds = array<i64: 32, 1>}, {transform_indices = @transform_2, window_bounds = array<i64: 1, 4, 32>}, {transform_indices = @transform_3, window_bounds = array<i64: 1, 1, 32>}, {transform_indices = @transform_4, window_bounds = array<i64: 1, 20, 32, 64>}, {transform_indices = @transform_5, window_bounds = array<i64: 1, 4, 1, 64>}, {transform_indices = @transform_6, window_bounds = array<i64: 1, 4, 32, 64>}, {transform_indices = @transform_7, window_bounds = array<i64: 1, 4, 1, 64>}, {transform_indices = @transform_8, window_bounds = array<i64: 1, 32, 4>}, {transform_indices = @transform_9, window_bounds = array<i64: 1, 1, 4>}, {transform_indices = @transform_10, window_bounds = array<i64: 32, 8>}]} {
    %c0 = arith.constant 0 : index
    %c0_0 = arith.constant 0 : index
    %0 = vector.load %arg3[%c0, %c0_0] : memref<32x1xf32, #tpu.memory_space<vmem>>, vector<32x1xf32>
    %c0_i32 = arith.constant 0 : i32
    %1 = arith.cmpi eq, %arg1, %c0_i32 : i32
    %2 = arith.extui %1 : i1 to i32
    %c0_i32_1 = arith.constant 0 : i32
    %3 = arith.cmpi ne, %2, %c0_i32_1 : i32
    scf.if %3 {
      %c0_230 = arith.constant 0 : index
      %c0_231 = arith.constant 0 : index
      %270 = vector.load %arg2[%c0_230, %c0_231] : memref<32x8xf32, #tpu.memory_space<vmem>>, vector<32x8xf32>
      %c0_232 = arith.constant 0 : index
      %c0_233 = arith.constant 0 : index
      %271 = vector.load %arg13[%c0_232, %c0_233] : memref<32x8xf32, #tpu.memory_space<vmem>>, vector<32x8xf32>
      tpu.vector_store %arg13[%c0_232, %c0_233], %270 {strides = array<i32>} : memref<32x8xf32, #tpu.memory_space<vmem>>, vector<32x8xf32>,
      %cst_234 = arith.constant 0.000000e+00 : bf16
      %272 = vector.broadcast %cst_234 : bf16 to vector<2x2x32xbf16>
      %c0_235 = arith.constant 0 : index
      %c0_236 = arith.constant 0 : index
      %c0_237 = arith.constant 0 : index
      %273 = vector.load %arg14[%c0_235, %c0_236, %c0_237] : memref<2x20x32xbf16, #tpu.memory_space<vmem>>, vector<2x2x32xbf16>
      tpu.vector_store %arg14[%c0_235, %c0_236, %c0_237], %272 {strides = array<i32>} : memref<2x20x32xbf16, #tpu.memory_space<vmem>>, vector<2x2x32xbf16>,
      %c0_238 = arith.constant 0 : index
      %c18_239 = arith.constant 18 : index
      %c0_240 = arith.constant 0 : index
      %274 = vector.load %arg14[%c0_238, %c18_239, %c0_240] : memref<2x20x32xbf16, #tpu.memory_space<vmem>>, vector<2x2x32xbf16>
      tpu.vector_store %arg14[%c0_238, %c18_239, %c0_240], %272 {strides = array<i32>} : memref<2x20x32xbf16, #tpu.memory_space<vmem>>, vector<2x2x32xbf16>,
    } else {
    }
    %c0_2 = arith.constant 0 : index
    %c0_3 = arith.constant 0 : index
    %4 = vector.load %arg13[%c0_2, %c0_3] : memref<32x8xf32, #tpu.memory_space<vmem>>, vector<32x8xf32>
    %5 = vector.extract_strided_slice %4 {offsets = [0, 0], sizes = [32, 4], strides = [1, 1]} : vector<32x8xf32> to vector<32x4xf32>
    %6 = vector.extract_strided_slice %4 {offsets = [0, 4], sizes = [32, 4], strides = [1, 1]} : vector<32x8xf32> to vector<32x4xf32>
    %7 = arith.truncf %5 : vector<32x4xf32> to vector<32x4xbf16>
    %c0_4 = arith.constant 0 : index
    %c0_5 = arith.constant 0 : index
    %c0_6 = arith.constant 0 : index
    %8 = vector.load %arg4[%c0_4, %c0_5, %c0_6] : memref<1x4x32xbf16, #tpu.memory_space<vmem>>, vector<1x4x32xbf16>
    %9 = vector.shape_cast %8 : vector<1x4x32xbf16> to vector<4x32xbf16>
    %cst = arith.constant dense<0.000000e+00> : vector<32x32xf32>
    %10 = tpu.matmul %7, %9, %cst {dimension_numbers = #tpu.dot_dimension_numbers<[1], [0], [0], [1], [0, 0, 1, 1], [], []>} : vector<32x4xbf16>, vector<4x32xbf16>, vector<32x32xf32> -> vector<32x32xf32>
    %c0_7 = arith.constant 0 : index
    %c0_8 = arith.constant 0 : index
    %c0_9 = arith.constant 0 : index
    %11 = vector.load %arg5[%c0_7, %c0_8, %c0_9] : memref<1x1x32xf32, #tpu.memory_space<vmem>>, vector<1x1x32xf32>
    %12 = vector.shape_cast %11 : vector<1x1x32xf32> to vector<1x32xf32>
    %13 = vector.broadcast %12 : vector<1x32xf32> to vector<32x32xf32>
    %14 = arith.addf %10, %13 : vector<32x32xf32>
    %15 = vector.broadcast %0 : vector<32x1xf32> to vector<32x32xf32>
    %16 = arith.mulf %14, %15 : vector<32x32xf32>
    %cst_10 = arith.constant 0.000000e+00 : f32
    %17 = vector.broadcast %cst_10 : f32 to vector<32x32xf32>
    %18 = arith.truncf %16 : vector<32x32xf32> to vector<32x32xbf16>
    %19 = vector.shape_cast %18 : vector<32x32xbf16> to vector<2x16x32xbf16>
    %c0_11 = arith.constant 0 : index
    %c2 = arith.constant 2 : index
    %c0_12 = arith.constant 0 : index
    %20 = vector.load %arg14[%c0_11, %c2, %c0_12] : memref<2x20x32xbf16, #tpu.memory_space<vmem>>, vector<2x16x32xbf16>
    tpu.vector_store %arg14[%c0_11, %c2, %c0_12], %19 {strides = array<i32>} : memref<2x20x32xbf16, #tpu.memory_space<vmem>>, vector<2x16x32xbf16>,
    %c0_13 = arith.constant 0 : index
    %c0_14 = arith.constant 0 : index
    %c0_15 = arith.constant 0 : index
    %21 = vector.load %arg14[%c0_13, %c0_14, %c0_15] : memref<2x20x32xbf16, #tpu.memory_space<vmem>>, vector<2x16x32xbf16>
    %22 = vector.shape_cast %21 : vector<2x16x32xbf16> to vector<32x32xbf16>
    %c0_16 = arith.constant 0 : index
    %c0_17 = arith.constant 0 : index
    %c0_18 = arith.constant 0 : index
    %c0_19 = arith.constant 0 : index
    %23 = vector.load %arg6[%c0_16, %c0_17, %c0_18, %c0_19] : memref<1x20x32x64xbf16, #tpu.memory_space<vmem>>, vector<1x1x32x64xbf16>
    %24 = vector.shape_cast %23 : vector<1x1x32x64xbf16> to vector<32x64xbf16>
    %cst_20 = arith.constant dense<0.000000e+00> : vector<32x64xf32>
    %25 = tpu.matmul %22, %24, %cst_20 {dimension_numbers = #tpu.dot_dimension_numbers<[1], [0], [0], [1], [0, 0, 1, 1], [], []>} : vector<32x32xbf16>, vector<32x64xbf16>, vector<32x64xf32> -> vector<32x64xf32>
    %c0_21 = arith.constant 0 : index
    %c1 = arith.constant 1 : index
    %c0_22 = arith.constant 0 : index
    %26 = vector.load %arg14[%c0_21, %c1, %c0_22] : memref<2x20x32xbf16, #tpu.memory_space<vmem>>, vector<2x16x32xbf16>
    %27 = vector.shape_cast %26 : vector<2x16x32xbf16> to vector<32x32xbf16>
    %c0_23 = arith.constant 0 : index
    %c1_24 = arith.constant 1 : index
    %c0_25 = arith.constant 0 : index
    %c0_26 = arith.constant 0 : index
    %28 = vector.load %arg6[%c0_23, %c1_24, %c0_25, %c0_26] : memref<1x20x32x64xbf16, #tpu.memory_space<vmem>>, vector<1x1x32x64xbf16>
    %29 = vector.shape_cast %28 : vector<1x1x32x64xbf16> to vector<32x64xbf16>
    %cst_27 = arith.constant dense<0.000000e+00> : vector<32x64xf32>
    %30 = tpu.matmul %27, %29, %cst_27 {dimension_numbers = #tpu.dot_dimension_numbers<[1], [0], [0], [1], [0, 0, 1, 1], [], []>} : vector<32x32xbf16>, vector<32x64xbf16>, vector<32x64xf32> -> vector<32x64xf32>
    %31 = arith.addf %25, %30 : vector<32x64xf32>
    %c0_28 = arith.constant 0 : index
    %c2_29 = arith.constant 2 : index
    %c0_30 = arith.constant 0 : index
    %32 = vector.load %arg14[%c0_28, %c2_29, %c0_30] : memref<2x20x32xbf16, #tpu.memory_space<vmem>>, vector<2x16x32xbf16>
    %33 = vector.shape_cast %32 : vector<2x16x32xbf16> to vector<32x32xbf16>
    %c0_31 = arith.constant 0 : index
    %c2_32 = arith.constant 2 : index
    %c0_33 = arith.constant 0 : index
    %c0_34 = arith.constant 0 : index
    %34 = vector.load %arg6[%c0_31, %c2_32, %c0_33, %c0_34] : memref<1x20x32x64xbf16, #tpu.memory_space<vmem>>, vector<1x1x32x64xbf16>
    %35 = vector.shape_cast %34 : vector<1x1x32x64xbf16> to vector<32x64xbf16>
    %cst_35 = arith.constant dense<0.000000e+00> : vector<32x64xf32>
    %36 = tpu.matmul %33, %35, %cst_35 {dimension_numbers = #tpu.dot_dimension_numbers<[1], [0], [0], [1], [0, 0, 1, 1], [], []>} : vector<32x32xbf16>, vector<32x64xbf16>, vector<32x64xf32> -> vector<32x64xf32>
    %37 = arith.addf %31, %36 : vector<32x64xf32>
    %c0_36 = arith.constant 0 : index
    %c3 = arith.constant 3 : index
    %c0_37 = arith.constant 0 : index
    %38 = vector.load %arg14[%c0_36, %c3, %c0_37] : memref<2x20x32xbf16, #tpu.memory_space<vmem>>, vector<2x16x32xbf16>
    %39 = vector.shape_cast %38 : vector<2x16x32xbf16> to vector<32x32xbf16>
    %c0_38 = arith.constant 0 : index
    %c3_39 = arith.constant 3 : index
    %c0_40 = arith.constant 0 : index
    %c0_41 = arith.constant 0 : index
    %40 = vector.load %arg6[%c0_38, %c3_39, %c0_40, %c0_41] : memref<1x20x32x64xbf16, #tpu.memory_space<vmem>>, vector<1x1x32x64xbf16>
    %41 = vector.shape_cast %40 : vector<1x1x32x64xbf16> to vector<32x64xbf16>
    %cst_42 = arith.constant dense<0.000000e+00> : vector<32x64xf32>
    %42 = tpu.matmul %39, %41, %cst_42 {dimension_numbers = #tpu.dot_dimension_numbers<[1], [0], [0], [1], [0, 0, 1, 1], [], []>} : vector<32x32xbf16>, vector<32x64xbf16>, vector<32x64xf32> -> vector<32x64xf32>
    %43 = arith.addf %37, %42 : vector<32x64xf32>
    %c0_43 = arith.constant 0 : index
    %c4 = arith.constant 4 : index
    %c0_44 = arith.constant 0 : index
    %44 = vector.load %arg14[%c0_43, %c4, %c0_44] : memref<2x20x32xbf16, #tpu.memory_space<vmem>>, vector<2x16x32xbf16>
    %45 = vector.shape_cast %44 : vector<2x16x32xbf16> to vector<32x32xbf16>
    %c0_45 = arith.constant 0 : index
    %c4_46 = arith.constant 4 : index
    %c0_47 = arith.constant 0 : index
    %c0_48 = arith.constant 0 : index
    %46 = vector.load %arg6[%c0_45, %c4_46, %c0_47, %c0_48] : memref<1x20x32x64xbf16, #tpu.memory_space<vmem>>, vector<1x1x32x64xbf16>
    %47 = vector.shape_cast %46 : vector<1x1x32x64xbf16> to vector<32x64xbf16>
    %cst_49 = arith.constant dense<0.000000e+00> : vector<32x64xf32>
    %48 = tpu.matmul %45, %47, %cst_49 {dimension_numbers = #tpu.dot_dimension_numbers<[1], [0], [0], [1], [0, 0, 1, 1], [], []>} : vector<32x32xbf16>, vector<32x64xbf16>, vector<32x64xf32> -> vector<32x64xf32>
    %49 = arith.addf %43, %48 : vector<32x64xf32>
    %c0_50 = arith.constant 0 : index
    %c0_51 = arith.constant 0 : index
    %c0_52 = arith.constant 0 : index
    %c0_53 = arith.constant 0 : index
    %50 = vector.load %arg7[%c0_50, %c0_51, %c0_52, %c0_53] : memref<1x4x1x64xf32, #tpu.memory_space<vmem>>, vector<1x1x1x64xf32>
    %51 = vector.shape_cast %50 : vector<1x1x1x64xf32> to vector<1x64xf32>
    %52 = vector.broadcast %51 : vector<1x64xf32> to vector<32x64xf32>
    %53 = arith.addf %49, %52 : vector<32x64xf32>
    %54 = vector.extract_strided_slice %53 {offsets = [0, 0], sizes = [32, 32], strides = [1, 1]} : vector<32x64xf32> to vector<32x32xf32>
    %55 = math.tanh %54 : vector<32x32xf32>
    %56 = vector.extract_strided_slice %53 {offsets = [0, 32], sizes = [32, 32], strides = [1, 1]} : vector<32x64xf32> to vector<32x32xf32>
    %57 = arith.negf %56 : vector<32x32xf32>
    %58 = math.exp %57 : vector<32x32xf32>
    %cst_54 = arith.constant 1.000000e+00 : f32
    %59 = vector.broadcast %cst_54 : f32 to vector<32x32xf32>
    %60 = arith.addf %59, %58 : vector<32x32xf32>
    %61 = arith.divf %59, %60 : vector<32x32xf32>
    %62 = arith.mulf %55, %61 : vector<32x32xf32>
    %63 = arith.truncf %62 : vector<32x32xf32> to vector<32x32xbf16>
    %c0_55 = arith.constant 0 : index
    %c0_56 = arith.constant 0 : index
    %c0_57 = arith.constant 0 : index
    %c0_58 = arith.constant 0 : index
    %64 = vector.load %arg8[%c0_55, %c0_56, %c0_57, %c0_58] : memref<1x4x32x64xbf16, #tpu.memory_space<vmem>>, vector<1x1x32x64xbf16>
    %65 = vector.shape_cast %64 : vector<1x1x32x64xbf16> to vector<32x64xbf16>
    %cst_59 = arith.constant dense<0.000000e+00> : vector<32x64xf32>
    %66 = tpu.matmul %63, %65, %cst_59 {dimension_numbers = #tpu.dot_dimension_numbers<[1], [0], [0], [1], [0, 0, 1, 1], [], []>} : vector<32x32xbf16>, vector<32x64xbf16>, vector<32x64xf32> -> vector<32x64xf32>
    %c0_60 = arith.constant 0 : index
    %c0_61 = arith.constant 0 : index
    %c0_62 = arith.constant 0 : index
    %c0_63 = arith.constant 0 : index
    %67 = vector.load %arg9[%c0_60, %c0_61, %c0_62, %c0_63] : memref<1x4x1x64xf32, #tpu.memory_space<vmem>>, vector<1x1x1x64xf32>
    %68 = vector.shape_cast %67 : vector<1x1x1x64xf32> to vector<1x64xf32>
    %69 = vector.broadcast %68 : vector<1x64xf32> to vector<32x64xf32>
    %70 = arith.addf %66, %69 : vector<32x64xf32>
    %71 = vector.extract_strided_slice %70 {offsets = [0, 0], sizes = [32, 32], strides = [1, 1]} : vector<32x64xf32> to vector<32x32xf32>
    %72 = arith.addf %16, %71 : vector<32x32xf32>
    %73 = vector.broadcast %0 : vector<32x1xf32> to vector<32x32xf32>
    %74 = arith.mulf %72, %73 : vector<32x32xf32>
    %75 = vector.extract_strided_slice %70 {offsets = [0, 32], sizes = [32, 32], strides = [1, 1]} : vector<32x64xf32> to vector<32x32xf32>
    %76 = arith.addf %17, %75 : vector<32x32xf32>
    %77 = arith.truncf %74 : vector<32x32xf32> to vector<32x32xbf16>
    %78 = vector.shape_cast %77 : vector<32x32xbf16> to vector<2x16x32xbf16>
    %c0_64 = arith.constant 0 : index
    %c2_65 = arith.constant 2 : index
    %c0_66 = arith.constant 0 : index
    %79 = vector.load %arg14[%c0_64, %c2_65, %c0_66] : memref<2x20x32xbf16, #tpu.memory_space<vmem>>, vector<2x16x32xbf16>
    tpu.vector_store %arg14[%c0_64, %c2_65, %c0_66], %78 {strides = array<i32>} : memref<2x20x32xbf16, #tpu.memory_space<vmem>>, vector<2x16x32xbf16>,
    %c0_67 = arith.constant 0 : index
    %c0_68 = arith.constant 0 : index
    %c0_69 = arith.constant 0 : index
    %80 = vector.load %arg14[%c0_67, %c0_68, %c0_69] : memref<2x20x32xbf16, #tpu.memory_space<vmem>>, vector<2x16x32xbf16>
    %81 = vector.shape_cast %80 : vector<2x16x32xbf16> to vector<32x32xbf16>
    %c0_70 = arith.constant 0 : index
    %c5 = arith.constant 5 : index
    %c0_71 = arith.constant 0 : index
    %c0_72 = arith.constant 0 : index
    %82 = vector.load %arg6[%c0_70, %c5, %c0_71, %c0_72] : memref<1x20x32x64xbf16, #tpu.memory_space<vmem>>, vector<1x1x32x64xbf16>
    %83 = vector.shape_cast %82 : vector<1x1x32x64xbf16> to vector<32x64xbf16>
    %cst_73 = arith.constant dense<0.000000e+00> : vector<32x64xf32>
    %84 = tpu.matmul %81, %83, %cst_73 {dimension_numbers = #tpu.dot_dimension_numbers<[1], [0], [0], [1], [0, 0, 1, 1], [], []>} : vector<32x32xbf16>, vector<32x64xbf16>, vector<32x64xf32> -> vector<32x64xf32>
    %c0_74 = arith.constant 0 : index
    %c1_75 = arith.constant 1 : index
    %c0_76 = arith.constant 0 : index
    %85 = vector.load %arg14[%c0_74, %c1_75, %c0_76] : memref<2x20x32xbf16, #tpu.memory_space<vmem>>, vector<2x16x32xbf16>
    %86 = vector.shape_cast %85 : vector<2x16x32xbf16> to vector<32x32xbf16>
    %c0_77 = arith.constant 0 : index
    %c6 = arith.constant 6 : index
    %c0_78 = arith.constant 0 : index
    %c0_79 = arith.constant 0 : index
    %87 = vector.load %arg6[%c0_77, %c6, %c0_78, %c0_79] : memref<1x20x32x64xbf16, #tpu.memory_space<vmem>>, vector<1x1x32x64xbf16>
    %88 = vector.shape_cast %87 : vector<1x1x32x64xbf16> to vector<32x64xbf16>
    %cst_80 = arith.constant dense<0.000000e+00> : vector<32x64xf32>
    %89 = tpu.matmul %86, %88, %cst_80 {dimension_numbers = #tpu.dot_dimension_numbers<[1], [0], [0], [1], [0, 0, 1, 1], [], []>} : vector<32x32xbf16>, vector<32x64xbf16>, vector<32x64xf32> -> vector<32x64xf32>
    %90 = arith.addf %84, %89 : vector<32x64xf32>
    %c0_81 = arith.constant 0 : index
    %c2_82 = arith.constant 2 : index
    %c0_83 = arith.constant 0 : index
    %91 = vector.load %arg14[%c0_81, %c2_82, %c0_83] : memref<2x20x32xbf16, #tpu.memory_space<vmem>>, vector<2x16x32xbf16>
    %92 = vector.shape_cast %91 : vector<2x16x32xbf16> to vector<32x32xbf16>
    %c0_84 = arith.constant 0 : index
    %c7 = arith.constant 7 : index
    %c0_85 = arith.constant 0 : index
    %c0_86 = arith.constant 0 : index
    %93 = vector.load %arg6[%c0_84, %c7, %c0_85, %c0_86] : memref<1x20x32x64xbf16, #tpu.memory_space<vmem>>, vector<1x1x32x64xbf16>
    %94 = vector.shape_cast %93 : vector<1x1x32x64xbf16> to vector<32x64xbf16>
    %cst_87 = arith.constant dense<0.000000e+00> : vector<32x64xf32>
    %95 = tpu.matmul %92, %94, %cst_87 {dimension_numbers = #tpu.dot_dimension_numbers<[1], [0], [0], [1], [0, 0, 1, 1], [], []>} : vector<32x32xbf16>, vector<32x64xbf16>, vector<32x64xf32> -> vector<32x64xf32>
    %96 = arith.addf %90, %95 : vector<32x64xf32>
    %c0_88 = arith.constant 0 : index
    %c3_89 = arith.constant 3 : index
    %c0_90 = arith.constant 0 : index
    %97 = vector.load %arg14[%c0_88, %c3_89, %c0_90] : memref<2x20x32xbf16, #tpu.memory_space<vmem>>, vector<2x16x32xbf16>
    %98 = vector.shape_cast %97 : vector<2x16x32xbf16> to vector<32x32xbf16>
    %c0_91 = arith.constant 0 : index
    %c8 = arith.constant 8 : index
    %c0_92 = arith.constant 0 : index
    %c0_93 = arith.constant 0 : index
    %99 = vector.load %arg6[%c0_91, %c8, %c0_92, %c0_93] : memref<1x20x32x64xbf16, #tpu.memory_space<vmem>>, vector<1x1x32x64xbf16>
    %100 = vector.shape_cast %99 : vector<1x1x32x64xbf16> to vector<32x64xbf16>
    %cst_94 = arith.constant dense<0.000000e+00> : vector<32x64xf32>
    %101 = tpu.matmul %98, %100, %cst_94 {dimension_numbers = #tpu.dot_dimension_numbers<[1], [0], [0], [1], [0, 0, 1, 1], [], []>} : vector<32x32xbf16>, vector<32x64xbf16>, vector<32x64xf32> -> vector<32x64xf32>
    %102 = arith.addf %96, %101 : vector<32x64xf32>
    %c0_95 = arith.constant 0 : index
    %c4_96 = arith.constant 4 : index
    %c0_97 = arith.constant 0 : index
    %103 = vector.load %arg14[%c0_95, %c4_96, %c0_97] : memref<2x20x32xbf16, #tpu.memory_space<vmem>>, vector<2x16x32xbf16>
    %104 = vector.shape_cast %103 : vector<2x16x32xbf16> to vector<32x32xbf16>
    %c0_98 = arith.constant 0 : index
    %c9 = arith.constant 9 : index
    %c0_99 = arith.constant 0 : index
    %c0_100 = arith.constant 0 : index
    %105 = vector.load %arg6[%c0_98, %c9, %c0_99, %c0_100] : memref<1x20x32x64xbf16, #tpu.memory_space<vmem>>, vector<1x1x32x64xbf16>
    %106 = vector.shape_cast %105 : vector<1x1x32x64xbf16> to vector<32x64xbf16>
    %cst_101 = arith.constant dense<0.000000e+00> : vector<32x64xf32>
    %107 = tpu.matmul %104, %106, %cst_101 {dimension_numbers = #tpu.dot_dimension_numbers<[1], [0], [0], [1], [0, 0, 1, 1], [], []>} : vector<32x32xbf16>, vector<32x64xbf16>, vector<32x64xf32> -> vector<32x64xf32>
    %108 = arith.addf %102, %107 : vector<32x64xf32>
    %c0_102 = arith.constant 0 : index
    %c1_103 = arith.constant 1 : index
    %c0_104 = arith.constant 0 : index
    %c0_105 = arith.constant 0 : index
    %109 = vector.load %arg7[%c0_102, %c1_103, %c0_104, %c0_105] : memref<1x4x1x64xf32, #tpu.memory_space<vmem>>, vector<1x1x1x64xf32>
    %110 = vector.shape_cast %109 : vector<1x1x1x64xf32> to vector<1x64xf32>
    %111 = vector.broadcast %110 : vector<1x64xf32> to vector<32x64xf32>
    %112 = arith.addf %108, %111 : vector<32x64xf32>
    %113 = vector.extract_strided_slice %112 {offsets = [0, 0], sizes = [32, 32], strides = [1, 1]} : vector<32x64xf32> to vector<32x32xf32>
    %114 = math.tanh %113 : vector<32x32xf32>
    %115 = vector.extract_strided_slice %112 {offsets = [0, 32], sizes = [32, 32], strides = [1, 1]} : vector<32x64xf32> to vector<32x32xf32>
    %116 = arith.negf %115 : vector<32x32xf32>
    %117 = math.exp %116 : vector<32x32xf32>
    %cst_106 = arith.constant 1.000000e+00 : f32
    %118 = vector.broadcast %cst_106 : f32 to vector<32x32xf32>
    %119 = arith.addf %118, %117 : vector<32x32xf32>
    %120 = arith.divf %118, %119 : vector<32x32xf32>
    %121 = arith.mulf %114, %120 : vector<32x32xf32>
    %122 = arith.truncf %121 : vector<32x32xf32> to vector<32x32xbf16>
    %c0_107 = arith.constant 0 : index
    %c1_108 = arith.constant 1 : index
    %c0_109 = arith.constant 0 : index
    %c0_110 = arith.constant 0 : index
    %123 = vector.load %arg8[%c0_107, %c1_108, %c0_109, %c0_110] : memref<1x4x32x64xbf16, #tpu.memory_space<vmem>>, vector<1x1x32x64xbf16>
    %124 = vector.shape_cast %123 : vector<1x1x32x64xbf16> to vector<32x64xbf16>
    %cst_111 = arith.constant dense<0.000000e+00> : vector<32x64xf32>
    %125 = tpu.matmul %122, %124, %cst_111 {dimension_numbers = #tpu.dot_dimension_numbers<[1], [0], [0], [1], [0, 0, 1, 1], [], []>} : vector<32x32xbf16>, vector<32x64xbf16>, vector<32x64xf32> -> vector<32x64xf32>
    %c0_112 = arith.constant 0 : index
    %c1_113 = arith.constant 1 : index
    %c0_114 = arith.constant 0 : index
    %c0_115 = arith.constant 0 : index
    %126 = vector.load %arg9[%c0_112, %c1_113, %c0_114, %c0_115] : memref<1x4x1x64xf32, #tpu.memory_space<vmem>>, vector<1x1x1x64xf32>
    %127 = vector.shape_cast %126 : vector<1x1x1x64xf32> to vector<1x64xf32>
    %128 = vector.broadcast %127 : vector<1x64xf32> to vector<32x64xf32>
    %129 = arith.addf %125, %128 : vector<32x64xf32>
    %130 = vector.extract_strided_slice %129 {offsets = [0, 0], sizes = [32, 32], strides = [1, 1]} : vector<32x64xf32> to vector<32x32xf32>
    %131 = arith.addf %74, %130 : vector<32x32xf32>
    %132 = vector.broadcast %0 : vector<32x1xf32> to vector<32x32xf32>
    %133 = arith.mulf %131, %132 : vector<32x32xf32>
    %134 = vector.extract_strided_slice %129 {offsets = [0, 32], sizes = [32, 32], strides = [1, 1]} : vector<32x64xf32> to vector<32x32xf32>
    %135 = arith.addf %76, %134 : vector<32x32xf32>
    %136 = arith.truncf %133 : vector<32x32xf32> to vector<32x32xbf16>
    %137 = vector.shape_cast %136 : vector<32x32xbf16> to vector<2x16x32xbf16>
    %c0_116 = arith.constant 0 : index
    %c2_117 = arith.constant 2 : index
    %c0_118 = arith.constant 0 : index
    %138 = vector.load %arg14[%c0_116, %c2_117, %c0_118] : memref<2x20x32xbf16, #tpu.memory_space<vmem>>, vector<2x16x32xbf16>
    tpu.vector_store %arg14[%c0_116, %c2_117, %c0_118], %137 {strides = array<i32>} : memref<2x20x32xbf16, #tpu.memory_space<vmem>>, vector<2x16x32xbf16>,
    %c0_119 = arith.constant 0 : index
    %c0_120 = arith.constant 0 : index
    %c0_121 = arith.constant 0 : index
    %139 = vector.load %arg14[%c0_119, %c0_120, %c0_121] : memref<2x20x32xbf16, #tpu.memory_space<vmem>>, vector<2x16x32xbf16>
    %140 = vector.shape_cast %139 : vector<2x16x32xbf16> to vector<32x32xbf16>
    %c0_122 = arith.constant 0 : index
    %c10 = arith.constant 10 : index
    %c0_123 = arith.constant 0 : index
    %c0_124 = arith.constant 0 : index
    %141 = vector.load %arg6[%c0_122, %c10, %c0_123, %c0_124] : memref<1x20x32x64xbf16, #tpu.memory_space<vmem>>, vector<1x1x32x64xbf16>
    %142 = vector.shape_cast %141 : vector<1x1x32x64xbf16> to vector<32x64xbf16>
    %cst_125 = arith.constant dense<0.000000e+00> : vector<32x64xf32>
    %143 = tpu.matmul %140, %142, %cst_125 {dimension_numbers = #tpu.dot_dimension_numbers<[1], [0], [0], [1], [0, 0, 1, 1], [], []>} : vector<32x32xbf16>, vector<32x64xbf16>, vector<32x64xf32> -> vector<32x64xf32>
    %c0_126 = arith.constant 0 : index
    %c1_127 = arith.constant 1 : index
    %c0_128 = arith.constant 0 : index
    %144 = vector.load %arg14[%c0_126, %c1_127, %c0_128] : memref<2x20x32xbf16, #tpu.memory_space<vmem>>, vector<2x16x32xbf16>
    %145 = vector.shape_cast %144 : vector<2x16x32xbf16> to vector<32x32xbf16>
    %c0_129 = arith.constant 0 : index
    %c11 = arith.constant 11 : index
    %c0_130 = arith.constant 0 : index
    %c0_131 = arith.constant 0 : index
    %146 = vector.load %arg6[%c0_129, %c11, %c0_130, %c0_131] : memref<1x20x32x64xbf16, #tpu.memory_space<vmem>>, vector<1x1x32x64xbf16>
    %147 = vector.shape_cast %146 : vector<1x1x32x64xbf16> to vector<32x64xbf16>
    %cst_132 = arith.constant dense<0.000000e+00> : vector<32x64xf32>
    %148 = tpu.matmul %145, %147, %cst_132 {dimension_numbers = #tpu.dot_dimension_numbers<[1], [0], [0], [1], [0, 0, 1, 1], [], []>} : vector<32x32xbf16>, vector<32x64xbf16>, vector<32x64xf32> -> vector<32x64xf32>
    %149 = arith.addf %143, %148 : vector<32x64xf32>
    %c0_133 = arith.constant 0 : index
    %c2_134 = arith.constant 2 : index
    %c0_135 = arith.constant 0 : index
    %150 = vector.load %arg14[%c0_133, %c2_134, %c0_135] : memref<2x20x32xbf16, #tpu.memory_space<vmem>>, vector<2x16x32xbf16>
    %151 = vector.shape_cast %150 : vector<2x16x32xbf16> to vector<32x32xbf16>
    %c0_136 = arith.constant 0 : index
    %c12 = arith.constant 12 : index
    %c0_137 = arith.constant 0 : index
    %c0_138 = arith.constant 0 : index
    %152 = vector.load %arg6[%c0_136, %c12, %c0_137, %c0_138] : memref<1x20x32x64xbf16, #tpu.memory_space<vmem>>, vector<1x1x32x64xbf16>
    %153 = vector.shape_cast %152 : vector<1x1x32x64xbf16> to vector<32x64xbf16>
    %cst_139 = arith.constant dense<0.000000e+00> : vector<32x64xf32>
    %154 = tpu.matmul %151, %153, %cst_139 {dimension_numbers = #tpu.dot_dimension_numbers<[1], [0], [0], [1], [0, 0, 1, 1], [], []>} : vector<32x32xbf16>, vector<32x64xbf16>, vector<32x64xf32> -> vector<32x64xf32>
    %155 = arith.addf %149, %154 : vector<32x64xf32>
    %c0_140 = arith.constant 0 : index
    %c3_141 = arith.constant 3 : index
    %c0_142 = arith.constant 0 : index
    %156 = vector.load %arg14[%c0_140, %c3_141, %c0_142] : memref<2x20x32xbf16, #tpu.memory_space<vmem>>, vector<2x16x32xbf16>
    %157 = vector.shape_cast %156 : vector<2x16x32xbf16> to vector<32x32xbf16>
    %c0_143 = arith.constant 0 : index
    %c13 = arith.constant 13 : index
    %c0_144 = arith.constant 0 : index
    %c0_145 = arith.constant 0 : index
    %158 = vector.load %arg6[%c0_143, %c13, %c0_144, %c0_145] : memref<1x20x32x64xbf16, #tpu.memory_space<vmem>>, vector<1x1x32x64xbf16>
    %159 = vector.shape_cast %158 : vector<1x1x32x64xbf16> to vector<32x64xbf16>
    %cst_146 = arith.constant dense<0.000000e+00> : vector<32x64xf32>
    %160 = tpu.matmul %157, %159, %cst_146 {dimension_numbers = #tpu.dot_dimension_numbers<[1], [0], [0], [1], [0, 0, 1, 1], [], []>} : vector<32x32xbf16>, vector<32x64xbf16>, vector<32x64xf32> -> vector<32x64xf32>
    %161 = arith.addf %155, %160 : vector<32x64xf32>
    %c0_147 = arith.constant 0 : index
    %c4_148 = arith.constant 4 : index
    %c0_149 = arith.constant 0 : index
    %162 = vector.load %arg14[%c0_147, %c4_148, %c0_149] : memref<2x20x32xbf16, #tpu.memory_space<vmem>>, vector<2x16x32xbf16>
    %163 = vector.shape_cast %162 : vector<2x16x32xbf16> to vector<32x32xbf16>
    %c0_150 = arith.constant 0 : index
    %c14 = arith.constant 14 : index
    %c0_151 = arith.constant 0 : index
    %c0_152 = arith.constant 0 : index
    %164 = vector.load %arg6[%c0_150, %c14, %c0_151, %c0_152] : memref<1x20x32x64xbf16, #tpu.memory_space<vmem>>, vector<1x1x32x64xbf16>
    %165 = vector.shape_cast %164 : vector<1x1x32x64xbf16> to vector<32x64xbf16>
    %cst_153 = arith.constant dense<0.000000e+00> : vector<32x64xf32>
    %166 = tpu.matmul %163, %165, %cst_153 {dimension_numbers = #tpu.dot_dimension_numbers<[1], [0], [0], [1], [0, 0, 1, 1], [], []>} : vector<32x32xbf16>, vector<32x64xbf16>, vector<32x64xf32> -> vector<32x64xf32>
    %167 = arith.addf %161, %166 : vector<32x64xf32>
    %c0_154 = arith.constant 0 : index
    %c2_155 = arith.constant 2 : index
    %c0_156 = arith.constant 0 : index
    %c0_157 = arith.constant 0 : index
    %168 = vector.load %arg7[%c0_154, %c2_155, %c0_156, %c0_157] : memref<1x4x1x64xf32, #tpu.memory_space<vmem>>, vector<1x1x1x64xf32>
    %169 = vector.shape_cast %168 : vector<1x1x1x64xf32> to vector<1x64xf32>
    %170 = vector.broadcast %169 : vector<1x64xf32> to vector<32x64xf32>
    %171 = arith.addf %167, %170 : vector<32x64xf32>
    %172 = vector.extract_strided_slice %171 {offsets = [0, 0], sizes = [32, 32], strides = [1, 1]} : vector<32x64xf32> to vector<32x32xf32>
    %173 = math.tanh %172 : vector<32x32xf32>
    %174 = vector.extract_strided_slice %171 {offsets = [0, 32], sizes = [32, 32], strides = [1, 1]} : vector<32x64xf32> to vector<32x32xf32>
    %175 = arith.negf %174 : vector<32x32xf32>
    %176 = math.exp %175 : vector<32x32xf32>
    %cst_158 = arith.constant 1.000000e+00 : f32
    %177 = vector.broadcast %cst_158 : f32 to vector<32x32xf32>
    %178 = arith.addf %177, %176 : vector<32x32xf32>
    %179 = arith.divf %177, %178 : vector<32x32xf32>
    %180 = arith.mulf %173, %179 : vector<32x32xf32>
    %181 = arith.truncf %180 : vector<32x32xf32> to vector<32x32xbf16>
    %c0_159 = arith.constant 0 : index
    %c2_160 = arith.constant 2 : index
    %c0_161 = arith.constant 0 : index
    %c0_162 = arith.constant 0 : index
    %182 = vector.load %arg8[%c0_159, %c2_160, %c0_161, %c0_162] : memref<1x4x32x64xbf16, #tpu.memory_space<vmem>>, vector<1x1x32x64xbf16>
    %183 = vector.shape_cast %182 : vector<1x1x32x64xbf16> to vector<32x64xbf16>
    %cst_163 = arith.constant dense<0.000000e+00> : vector<32x64xf32>
    %184 = tpu.matmul %181, %183, %cst_163 {dimension_numbers = #tpu.dot_dimension_numbers<[1], [0], [0], [1], [0, 0, 1, 1], [], []>} : vector<32x32xbf16>, vector<32x64xbf16>, vector<32x64xf32> -> vector<32x64xf32>
    %c0_164 = arith.constant 0 : index
    %c2_165 = arith.constant 2 : index
    %c0_166 = arith.constant 0 : index
    %c0_167 = arith.constant 0 : index
    %185 = vector.load %arg9[%c0_164, %c2_165, %c0_166, %c0_167] : memref<1x4x1x64xf32, #tpu.memory_space<vmem>>, vector<1x1x1x64xf32>
    %186 = vector.shape_cast %185 : vector<1x1x1x64xf32> to vector<1x64xf32>
    %187 = vector.broadcast %186 : vector<1x64xf32> to vector<32x64xf32>
    %188 = arith.addf %184, %187 : vector<32x64xf32>
    %189 = vector.extract_strided_slice %188 {offsets = [0, 0], sizes = [32, 32], strides = [1, 1]} : vector<32x64xf32> to vector<32x32xf32>
    %190 = arith.addf %133, %189 : vector<32x32xf32>
    %191 = vector.broadcast %0 : vector<32x1xf32> to vector<32x32xf32>
    %192 = arith.mulf %190, %191 : vector<32x32xf32>
    %193 = vector.extract_strided_slice %188 {offsets = [0, 32], sizes = [32, 32], strides = [1, 1]} : vector<32x64xf32> to vector<32x32xf32>
    %194 = arith.addf %135, %193 : vector<32x32xf32>
    %195 = arith.truncf %192 : vector<32x32xf32> to vector<32x32xbf16>
    %196 = vector.shape_cast %195 : vector<32x32xbf16> to vector<2x16x32xbf16>
    %c0_168 = arith.constant 0 : index
    %c2_169 = arith.constant 2 : index
    %c0_170 = arith.constant 0 : index
    %197 = vector.load %arg14[%c0_168, %c2_169, %c0_170] : memref<2x20x32xbf16, #tpu.memory_space<vmem>>, vector<2x16x32xbf16>
    tpu.vector_store %arg14[%c0_168, %c2_169, %c0_170], %196 {strides = array<i32>} : memref<2x20x32xbf16, #tpu.memory_space<vmem>>, vector<2x16x32xbf16>,
    %c0_171 = arith.constant 0 : index
    %c0_172 = arith.constant 0 : index
    %c0_173 = arith.constant 0 : index
    %198 = vector.load %arg14[%c0_171, %c0_172, %c0_173] : memref<2x20x32xbf16, #tpu.memory_space<vmem>>, vector<2x16x32xbf16>
    %199 = vector.shape_cast %198 : vector<2x16x32xbf16> to vector<32x32xbf16>
    %c0_174 = arith.constant 0 : index
    %c15 = arith.constant 15 : index
    %c0_175 = arith.constant 0 : index
    %c0_176 = arith.constant 0 : index
    %200 = vector.load %arg6[%c0_174, %c15, %c0_175, %c0_176] : memref<1x20x32x64xbf16, #tpu.memory_space<vmem>>, vector<1x1x32x64xbf16>
    %201 = vector.shape_cast %200 : vector<1x1x32x64xbf16> to vector<32x64xbf16>
    %cst_177 = arith.constant dense<0.000000e+00> : vector<32x64xf32>
    %202 = tpu.matmul %199, %201, %cst_177 {dimension_numbers = #tpu.dot_dimension_numbers<[1], [0], [0], [1], [0, 0, 1, 1], [], []>} : vector<32x32xbf16>, vector<32x64xbf16>, vector<32x64xf32> -> vector<32x64xf32>
    %c0_178 = arith.constant 0 : index
    %c1_179 = arith.constant 1 : index
    %c0_180 = arith.constant 0 : index
    %203 = vector.load %arg14[%c0_178, %c1_179, %c0_180] : memref<2x20x32xbf16, #tpu.memory_space<vmem>>, vector<2x16x32xbf16>
    %204 = vector.shape_cast %203 : vector<2x16x32xbf16> to vector<32x32xbf16>
    %c0_181 = arith.constant 0 : index
    %c16 = arith.constant 16 : index
    %c0_182 = arith.constant 0 : index
    %c0_183 = arith.constant 0 : index
    %205 = vector.load %arg6[%c0_181, %c16, %c0_182, %c0_183] : memref<1x20x32x64xbf16, #tpu.memory_space<vmem>>, vector<1x1x32x64xbf16>
    %206 = vector.shape_cast %205 : vector<1x1x32x64xbf16> to vector<32x64xbf16>
    %cst_184 = arith.constant dense<0.000000e+00> : vector<32x64xf32>
    %207 = tpu.matmul %204, %206, %cst_184 {dimension_numbers = #tpu.dot_dimension_numbers<[1], [0], [0], [1], [0, 0, 1, 1], [], []>} : vector<32x32xbf16>, vector<32x64xbf16>, vector<32x64xf32> -> vector<32x64xf32>
    %208 = arith.addf %202, %207 : vector<32x64xf32>
    %c0_185 = arith.constant 0 : index
    %c2_186 = arith.constant 2 : index
    %c0_187 = arith.constant 0 : index
    %209 = vector.load %arg14[%c0_185, %c2_186, %c0_187] : memref<2x20x32xbf16, #tpu.memory_space<vmem>>, vector<2x16x32xbf16>
    %210 = vector.shape_cast %209 : vector<2x16x32xbf16> to vector<32x32xbf16>
    %c0_188 = arith.constant 0 : index
    %c17 = arith.constant 17 : index
    %c0_189 = arith.constant 0 : index
    %c0_190 = arith.constant 0 : index
    %211 = vector.load %arg6[%c0_188, %c17, %c0_189, %c0_190] : memref<1x20x32x64xbf16, #tpu.memory_space<vmem>>, vector<1x1x32x64xbf16>
    %212 = vector.shape_cast %211 : vector<1x1x32x64xbf16> to vector<32x64xbf16>
    %cst_191 = arith.constant dense<0.000000e+00> : vector<32x64xf32>
    %213 = tpu.matmul %210, %212, %cst_191 {dimension_numbers = #tpu.dot_dimension_numbers<[1], [0], [0], [1], [0, 0, 1, 1], [], []>} : vector<32x32xbf16>, vector<32x64xbf16>, vector<32x64xf32> -> vector<32x64xf32>
    %214 = arith.addf %208, %213 : vector<32x64xf32>
    %c0_192 = arith.constant 0 : index
    %c3_193 = arith.constant 3 : index
    %c0_194 = arith.constant 0 : index
    %215 = vector.load %arg14[%c0_192, %c3_193, %c0_194] : memref<2x20x32xbf16, #tpu.memory_space<vmem>>, vector<2x16x32xbf16>
    %216 = vector.shape_cast %215 : vector<2x16x32xbf16> to vector<32x32xbf16>
    %c0_195 = arith.constant 0 : index
    %c18 = arith.constant 18 : index
    %c0_196 = arith.constant 0 : index
    %c0_197 = arith.constant 0 : index
    %217 = vector.load %arg6[%c0_195, %c18, %c0_196, %c0_197] : memref<1x20x32x64xbf16, #tpu.memory_space<vmem>>, vector<1x1x32x64xbf16>
    %218 = vector.shape_cast %217 : vector<1x1x32x64xbf16> to vector<32x64xbf16>
    %cst_198 = arith.constant dense<0.000000e+00> : vector<32x64xf32>
    %219 = tpu.matmul %216, %218, %cst_198 {dimension_numbers = #tpu.dot_dimension_numbers<[1], [0], [0], [1], [0, 0, 1, 1], [], []>} : vector<32x32xbf16>, vector<32x64xbf16>, vector<32x64xf32> -> vector<32x64xf32>
    %220 = arith.addf %214, %219 : vector<32x64xf32>
    %c0_199 = arith.constant 0 : index
    %c4_200 = arith.constant 4 : index
    %c0_201 = arith.constant 0 : index
    %221 = vector.load %arg14[%c0_199, %c4_200, %c0_201] : memref<2x20x32xbf16, #tpu.memory_space<vmem>>, vector<2x16x32xbf16>
    %222 = vector.shape_cast %221 : vector<2x16x32xbf16> to vector<32x32xbf16>
    %c0_202 = arith.constant 0 : index
    %c19 = arith.constant 19 : index
    %c0_203 = arith.constant 0 : index
    %c0_204 = arith.constant 0 : index
    %223 = vector.load %arg6[%c0_202, %c19, %c0_203, %c0_204] : memref<1x20x32x64xbf16, #tpu.memory_space<vmem>>, vector<1x1x32x64xbf16>
    %224 = vector.shape_cast %223 : vector<1x1x32x64xbf16> to vector<32x64xbf16>
    %cst_205 = arith.constant dense<0.000000e+00> : vector<32x64xf32>
    %225 = tpu.matmul %222, %224, %cst_205 {dimension_numbers = #tpu.dot_dimension_numbers<[1], [0], [0], [1], [0, 0, 1, 1], [], []>} : vector<32x32xbf16>, vector<32x64xbf16>, vector<32x64xf32> -> vector<32x64xf32>
    %226 = arith.addf %220, %225 : vector<32x64xf32>
    %c0_206 = arith.constant 0 : index
    %c3_207 = arith.constant 3 : index
    %c0_208 = arith.constant 0 : index
    %c0_209 = arith.constant 0 : index
    %227 = vector.load %arg7[%c0_206, %c3_207, %c0_208, %c0_209] : memref<1x4x1x64xf32, #tpu.memory_space<vmem>>, vector<1x1x1x64xf32>
    %228 = vector.shape_cast %227 : vector<1x1x1x64xf32> to vector<1x64xf32>
    %229 = vector.broadcast %228 : vector<1x64xf32> to vector<32x64xf32>
    %230 = arith.addf %226, %229 : vector<32x64xf32>
    %231 = vector.extract_strided_slice %230 {offsets = [0, 0], sizes = [32, 32], strides = [1, 1]} : vector<32x64xf32> to vector<32x32xf32>
    %232 = math.tanh %231 : vector<32x32xf32>
    %233 = vector.extract_strided_slice %230 {offsets = [0, 32], sizes = [32, 32], strides = [1, 1]} : vector<32x64xf32> to vector<32x32xf32>
    %234 = arith.negf %233 : vector<32x32xf32>
    %235 = math.exp %234 : vector<32x32xf32>
    %cst_210 = arith.constant 1.000000e+00 : f32
    %236 = vector.broadcast %cst_210 : f32 to vector<32x32xf32>
    %237 = arith.addf %236, %235 : vector<32x32xf32>
    %238 = arith.divf %236, %237 : vector<32x32xf32>
    %239 = arith.mulf %232, %238 : vector<32x32xf32>
    %240 = arith.truncf %239 : vector<32x32xf32> to vector<32x32xbf16>
    %c0_211 = arith.constant 0 : index
    %c3_212 = arith.constant 3 : index
    %c0_213 = arith.constant 0 : index
    %c0_214 = arith.constant 0 : index
    %241 = vector.load %arg8[%c0_211, %c3_212, %c0_213, %c0_214] : memref<1x4x32x64xbf16, #tpu.memory_space<vmem>>, vector<1x1x32x64xbf16>
    %242 = vector.shape_cast %241 : vector<1x1x32x64xbf16> to vector<32x64xbf16>
    %cst_215 = arith.constant dense<0.000000e+00> : vector<32x64xf32>
    %243 = tpu.matmul %240, %242, %cst_215 {dimension_numbers = #tpu.dot_dimension_numbers<[1], [0], [0], [1], [0, 0, 1, 1], [], []>} : vector<32x32xbf16>, vector<32x64xbf16>, vector<32x64xf32> -> vector<32x64xf32>
    %c0_216 = arith.constant 0 : index
    %c3_217 = arith.constant 3 : index
    %c0_218 = arith.constant 0 : index
    %c0_219 = arith.constant 0 : index
    %244 = vector.load %arg9[%c0_216, %c3_217, %c0_218, %c0_219] : memref<1x4x1x64xf32, #tpu.memory_space<vmem>>, vector<1x1x1x64xf32>
    %245 = vector.shape_cast %244 : vector<1x1x1x64xf32> to vector<1x64xf32>
    %246 = vector.broadcast %245 : vector<1x64xf32> to vector<32x64xf32>
    %247 = arith.addf %243, %246 : vector<32x64xf32>
    %248 = vector.extract_strided_slice %247 {offsets = [0, 32], sizes = [32, 32], strides = [1, 1]} : vector<32x64xf32> to vector<32x32xf32>
    %249 = arith.addf %194, %248 : vector<32x32xf32>
    %250 = vector.broadcast %0 : vector<32x1xf32> to vector<32x32xf32>
    %251 = arith.mulf %249, %250 : vector<32x32xf32>
    %252 = arith.truncf %251 : vector<32x32xf32> to vector<32x32xbf16>
    %c0_220 = arith.constant 0 : index
    %c0_221 = arith.constant 0 : index
    %c0_222 = arith.constant 0 : index
    %253 = vector.load %arg10[%c0_220, %c0_221, %c0_222] : memref<1x32x4xbf16, #tpu.memory_space<vmem>>, vector<1x32x4xbf16>
    %254 = vector.shape_cast %253 : vector<1x32x4xbf16> to vector<32x4xbf16>
    %cst_223 = arith.constant dense<0.000000e+00> : vector<32x4xf32>
    %255 = tpu.matmul %252, %254, %cst_223 {dimension_numbers = #tpu.dot_dimension_numbers<[1], [0], [0], [1], [0, 0, 1, 1], [], []>} : vector<32x32xbf16>, vector<32x4xbf16>, vector<32x4xf32> -> vector<32x4xf32>
    %c0_224 = arith.constant 0 : index
    %c0_225 = arith.constant 0 : index
    %c0_226 = arith.constant 0 : index
    %256 = vector.load %arg11[%c0_224, %c0_225, %c0_226] : memref<1x1x4xf32, #tpu.memory_space<vmem>>, vector<1x1x4xf32>
    %257 = vector.shape_cast %256 : vector<1x1x4xf32> to vector<1x4xf32>
    %258 = vector.broadcast %257 : vector<1x4xf32> to vector<32x4xf32>
    %259 = arith.addf %255, %258 : vector<32x4xf32>
    %260 = vector.broadcast %0 : vector<32x1xf32> to vector<32x4xf32>
    %261 = arith.mulf %259, %260 : vector<32x4xf32>
    %262 = vector.broadcast %0 : vector<32x1xf32> to vector<32x4xf32>
    %263 = arith.mulf %6, %262 : vector<32x4xf32>
    %264 = arith.addf %261, %263 : vector<32x4xf32>
    %265 = tpu.concatenate %264, %5 in 1 : vector<32x4xf32>, vector<32x4xf32> -> vector<32x8xf32>
    %c0_227 = arith.constant 0 : index
    %c0_228 = arith.constant 0 : index
    %266 = vector.load %arg13[%c0_227, %c0_228] : memref<32x8xf32, #tpu.memory_space<vmem>>, vector<32x8xf32>
    tpu.vector_store %arg13[%c0_227, %c0_228], %265 {strides = array<i32>} : memref<32x8xf32, #tpu.memory_space<vmem>>, vector<32x8xf32>,
    %c3_i32 = arith.constant 3 : i32
    %267 = arith.cmpi eq, %arg1, %c3_i32 : i32
    %268 = arith.extui %267 : i1 to i32
    %c0_i32_229 = arith.constant 0 : i32
    %269 = arith.cmpi ne, %268, %c0_i32_229 : i32
    scf.if %269 {
      %c0_230 = arith.constant 0 : index
      %c0_231 = arith.constant 0 : index
      %270 = vector.load %arg12[%c0_230, %c0_231] : memref<32x8xf32, #tpu.memory_space<vmem>>, vector<32x8xf32>
      tpu.vector_store %arg12[%c0_230, %c0_231], %265 {strides = array<i32>} : memref<32x8xf32, #tpu.memory_space<vmem>>, vector<32x8xf32>,
    } else {
    }
    return
  }
  func.func @transform_0(%arg0: i32, %arg1: i32) -> (i32, i32) {
    %c0_i32 = arith.constant 0 : i32
    %c0_i32_0 = arith.constant 0 : i32
    return %arg0, %c0_i32 : i32, i32
  }
  func.func @transform_1(%arg0: i32, %arg1: i32) -> (i32, i32) {
    %c0_i32 = arith.constant 0 : i32
    %c0_i32_0 = arith.constant 0 : i32
    return %arg0, %c0_i32 : i32, i32
  }
  func.func @transform_2(%arg0: i32, %arg1: i32) -> (i32, i32, i32) {
    %c0_i32 = arith.constant 0 : i32
    %c0_i32_0 = arith.constant 0 : i32
    %c0_i32_1 = arith.constant 0 : i32
    return %arg1, %c0_i32, %c0_i32_0 : i32, i32, i32
  }
  func.func @transform_3(%arg0: i32, %arg1: i32) -> (i32, i32, i32) {
    %c0_i32 = arith.constant 0 : i32
    %c0_i32_0 = arith.constant 0 : i32
    %c0_i32_1 = arith.constant 0 : i32
    return %arg1, %c0_i32, %c0_i32_0 : i32, i32, i32
  }
  func.func @transform_4(%arg0: i32, %arg1: i32) -> (i32, i32, i32, i32) {
    %c0_i32 = arith.constant 0 : i32
    %c0_i32_0 = arith.constant 0 : i32
    %c0_i32_1 = arith.constant 0 : i32
    %c0_i32_2 = arith.constant 0 : i32
    return %arg1, %c0_i32, %c0_i32_0, %c0_i32_1 : i32, i32, i32, i32
  }
  func.func @transform_5(%arg0: i32, %arg1: i32) -> (i32, i32, i32, i32) {
    %c0_i32 = arith.constant 0 : i32
    %c0_i32_0 = arith.constant 0 : i32
    %c0_i32_1 = arith.constant 0 : i32
    %c0_i32_2 = arith.constant 0 : i32
    return %arg1, %c0_i32, %c0_i32_0, %c0_i32_1 : i32, i32, i32, i32
  }
  func.func @transform_6(%arg0: i32, %arg1: i32) -> (i32, i32, i32, i32) {
    %c0_i32 = arith.constant 0 : i32
    %c0_i32_0 = arith.constant 0 : i32
    %c0_i32_1 = arith.constant 0 : i32
    %c0_i32_2 = arith.constant 0 : i32
    return %arg1, %c0_i32, %c0_i32_0, %c0_i32_1 : i32, i32, i32, i32
  }
  func.func @transform_7(%arg0: i32, %arg1: i32) -> (i32, i32, i32, i32) {
    %c0_i32 = arith.constant 0 : i32
    %c0_i32_0 = arith.constant 0 : i32
    %c0_i32_1 = arith.constant 0 : i32
    %c0_i32_2 = arith.constant 0 : i32
    return %arg1, %c0_i32, %c0_i32_0, %c0_i32_1 : i32, i32, i32, i32
  }
  func.func @transform_8(%arg0: i32, %arg1: i32) -> (i32, i32, i32) {
    %c0_i32 = arith.constant 0 : i32
    %c0_i32_0 = arith.constant 0 : i32
    %c0_i32_1 = arith.constant 0 : i32
    return %arg1, %c0_i32, %c0_i32_0 : i32, i32, i32
  }
  func.func @transform_9(%arg0: i32, %arg1: i32) -> (i32, i32, i32) {
    %c0_i32 = arith.constant 0 : i32
    %c0_i32_0 = arith.constant 0 : i32
    %c0_i32_1 = arith.constant 0 : i32
    return %arg1, %c0_i32, %c0_i32_0 : i32, i32, i32
  }
  func.func @transform_10(%arg0: i32, %arg1: i32) -> (i32, i32) {
    %c0_i32 = arith.constant 0 : i32
    %c0_i32_0 = arith.constant 0 : i32
    return %arg0, %c0_i32 : i32, i32
  }
}

</mosaic_0001>

<bundles_post_ra>
// kernel: tpu_custom_call.1
= control target key start
LH: loop header
LB: loop body
LE: loop exit
PB: predicated region body
PF: predicated region fallthrough
CT: control target
= control target key end

     0   :  { %s6032_s0 = inlined_call_operand.vmem [shape: f32[64,8], index: 0, kind: input, shape index: {}]   ;;  %s6033_s1 = inlined_call_operand.vmem [shape: f32[64,1], index: 1, kind: input, shape index: {}]   ;;  %s6034_s2 = inlined_call_operand.vmem [shape: bf16[4,4,32], index: 2, kind: input, shape index: {}]   ;;  %s6035_s3 = inlined_call_operand.vmem [shape: f32[4,1,32], index: 3, kind: input, shape index: {}]   ;;  %s6036_s4 = inlined_call_operand.hbm [shape: bf16[4,20,32,64], index: 4, kind: input, shape index: {}]   ;;  %s6037_s5 = inlined_call_operand.vmem [shape: f32[4,4,1,64], index: 5, kind: input, shape index: {}]   ;;  %s6038_s6 = inlined_call_operand.hbm [shape: bf16[4,4,32,64], index: 6, kind: input, shape index: {}]   ;;  %s6039_s7 = inlined_call_operand.vmem [shape: f32[4,4,1,64], index: 7, kind: input, shape index: {}]   ;;  %s6040_s8 = inlined_call_operand.vmem [shape: bf16[4,32,4], index: 8, kind: input, shape index: {}]   ;;  %s6041_s9 = inlined_call_operand.vmem [shape: f32[4,1,4], index: 9, kind: input, shape index: {}]   ;;  %s6042_s10 = inlined_call_operand.vmem [shape: f32[64,8], index: 10, kind: output, shape index: {}]  }
   0x1   :  { %6050 = sst [smem:[#allocation18_spill]] %s6036_s4 }
   0x2   :  { %6051 = sst [smem:[#allocation19_spill]] %s6038_s6 }
   0x3   :  { %15 = vsyncpa [#allocation5], 0 }
   0x4   :  { %17 = vsyncpa [#allocation5 + $0x1], 0 }
   0x5   :  { %18 = vsyncpa [#allocation7], 0 }
   0x6   :  { %20 = vsyncpa [#allocation7 + $0x1], 0  ;;  %s5145_s13 = smov 0   ;;  %s5147_s14 = smov 0  }
   0x7   :  { %s5149_s15 = smov 0   ;;  %s5151_s16 = smov 0  }
   0x8   :  { %s5153_s17 = smov 0   ;;  %s5155_s18 = smov 0  }
   0x9   :  { %s5157_s19 = smov 0   ;;  %s5159_s20 = smov 0  }
   0xa LB: > { %6052 = sst [smem:[#allocation10_spill]] %s5055_s14  ;;  %s3992_s21 = sadd.s32 4294967295, %s5079_s20   ;;  %s5079_s20 = sphi %s5159_s20, %s26_s20   ;;  %s5075_s19 = sphi %s5157_s19, %s6084_s19   ;;  %s5071_s18 = sphi %s5155_s18, %s6083_s18   ;;  %s5067_s17 = sphi %s5153_s17, %s6082_s17   ;;  %s5063_s16 = sphi %s5151_s16, %s6081_s16   ;;  %s5059_s15 = sphi %s5149_s15, %s6080_s15   ;;  %s5055_s14 = sphi %s5147_s14, %s6079_s14   ;;  %s5051_s13 = sphi %s5145_s13, %s6078_s13  }
   0xb   : > { %6053 = sst [smem:[#allocation11_spill]] %s5059_s15  ;;  %s35_s22 = sadd.s32 1, %s5071_s18 }
   0xc   : > { %6054 = sst [smem:[#allocation12_spill]] %s5071_s18  ;;  %p36_p0 = scmp.ge.s32.totalorder %s35_s22, 4 }
   0xd   : > { %6055 = sst [smem:[#allocation13_spill]] %s5075_s19  ;;  %s38_s23 = sadd.s32 1, %s5075_s19 }
   0xe   : > { %6056 = sst [smem:[#allocation14_spill]] %s5079_s20  ;;  %s149_s24 = sadd.s32 1, %s5059_s15 }
   0xf   : > { %p156_p1 = scmp.ne.s32.totalorder %s5059_s15, %s5055_s14  ;;  %s6086_s22 = smov (%p36_p0, %s35_s22), 0 }
  0x10   : > { %6057 = sst [smem:[#allocation15_spill]] %s6086_s22  ;;  %s6088_s23 = smov (!%p36_p0, %s38_s23), %s5075_s19 }
  0x11   : > { %s146_s25 = ssub.s32 %s5071_s18, %s6086_s22  ;;  %p157_p2 = scmp.eq.s32.totalorder %s5079_s20, 0 }
  0x12   : > { %p40_p3 = scmp.ge.s32.totalorder %s6088_s23, 2  ;;  %p147_p4 = scmp.eq.s32.totalorder %s146_s25, 0 }
  0x13   : > { %p158_p5 = por %p157_p2, %p156_p1  ;;  %p162_p6 = scmp.ne.s32.totalorder %s5055_s14, %s5051_s13 }
  0x14   : > { %s6090_s23 = smov (%p40_p3, %s6088_s23), 0  ;;  %p163_p7 = scmp.eq.s32.totalorder %s3992_s21, 0 }
  0x15   : > { %6058 = sst [smem:[#allocation16_spill]] %s6090_s23  ;;  %p4717_p8 = scmp.lt.s32.totalorder %s5079_s20, 8 }
  0x16   : > { %s5199_s26 = scalar_select %p147_p4, %s5059_s15, %s149_s24  }
  0x17   : > { %s5203_s27 = sand.u32 1, %s5059_s15   ;;  %p5205_p9 = por %p163_p7, %p162_p6 }
  0x18   : > { %6059 = sst [smem:[#allocation17_spill]] %s5199_s26  ;;  %s4703_s29 = smul.u32 320, %s5203_s27 }
  0x19   : > { %s6060_s28 = scalar_select %p5205_p9, 1, 0 }
  0x1a   : > { %p5210_p10 = pnand %p4717_p8, %p158_p5  ;;  %s4704_s11 = smul.u32 5120, %s5071_s18 }
  0x1b   : > { %s6062_s4 = sld [smem:[#allocation18_spill]]  ;;  %s377_s24 = scalar_lea.vmem [#allocation4], %s4703_s29 }
  0x1c   : > { %s384_s25 = sshll.u32 %s377_s24, 4  ;;  %s374_s23 = scalar_lea.sflag [#allocation5], %s5203_s27  ;;  %s5220_s25 = int_to_ptr.vmem [resolvable:$true] %s384_s25 }
  0x1d   : > { %p4951_p12 = pneg %p5210_p10 }
  0x21   : > { %s5218_s21 = scalar_lea.hbm %s6062_s4, %s4704_s11  ;;  %s4954_s13 = scalar_lea.hbm %s6062_s4, 20480 }
  0x22   : > { %s4949_s22 = scalar_lea.hbm %s5218_s21, 5120  ;;  %p4955_p1 = scmp.lt.u32.totalorder %s5218_s21, %s6062_s4 }
  0x23   : > { %p4950_p11 = scmp.ne.s32.totalorder %s5218_s21, %s4949_s22  ;;  %p4956_p2 = scmp.lt.u32.totalorder %s4954_s13, %s4949_s22 }
  0x24   : > { %p4958_p4 = scmp.lt.u32.totalorder %s4949_s22, %s5218_s21 }
  0x25   : > { %p4952_p13 = pnand %p4951_p12, %p4950_p11  ;;  %p4957_p3 = por %p4956_p2, %p4955_p1 }
  0x27   : > { %p4953_p0 = pneg %p4952_p13  ;;  %p4959_p5 = por %p4958_p4, %p4957_p3 }
  0x29   : > { %p4960_p6 = pnand %p4959_p5, %p4953_p0 }
  0x2b   : > { %4963 = shalt.err (!%p4960_p6)
}
  0x2c   : > { %s4964_s29 = scalar_lea.vmem %s5220_s25, 5120  ;;  %s5081_s24 = smov [#allocation4]  }
  0x2d   : > { %p4965_p7 = scmp.ne.s32.totalorder %s5220_s25, %s4964_s29  ;;  %s4969_s12 = sshll.u32 %s5081_s24, 4  ;;  %s4970_s12 = int_to_ptr.vmem [resolvable:$false] %s4969_s12 }
  0x2e   : > { %s4971_s19 = scalar_lea.vmem %s4970_s12, 10240  ;;  %p4972_p13 = scmp.lt.s32.totalorder %s5220_s25, %s4970_s12 }
  0x2f   : > { %p4967_p8 = pnand %p4965_p7, %p4951_p12  ;;  %p4973_p1 = scmp.lt.s32.totalorder %s4971_s19, %s4964_s29 }
  0x31   : > { %p4968_p11 = pneg %p4967_p8  ;;  %p4974_p2 = por %p4973_p1, %p4972_p13 }
  0x33   : > { %p4975_p3 = pnand %p4974_p2, %p4968_p11 }
  0x35   : > { %4978 = shalt.err (!%p4975_p3)
}
  0x36   : > { %s5082_s22 = smov 64   ;;  %s5083_s26 = smov 4  }
  0x37   : > { %4713 = dma.hbm_to_vmem [thread:$0]  (!%p5210_p10), %s5218_s21, 5120, %s5220_s25, %s374_s23, %s5082_s22, %s5082_s22, %s5083_s26  }
  0x38   : > { %p4000_p0 = scmp.ge.s32.totalorder %s5079_s20, 1  ;;  %p441_p4 = scmp.lt.s32.totalorder %s5079_s20, 9 }
  0x39   : > { %s3997_s11 = sshll.u32 %s5203_s27, 6  ;;  %s4311_s29 = sshll.u32 %s5071_s18, 10 }
  0x3a   : > { %p5256_p5 = pnand %p4000_p0, %p441_p4  ;;  %s405_s24 = scalar_lea.vmem [#allocation6], %s3997_s11 }
  0x3b   : > { %s412_s12 = sshll.u32 %s405_s24, 4  ;;  %s6064_s6 = sld [smem:[#allocation19_spill]]  ;;  %s5266_s12 = int_to_ptr.vmem [resolvable:$true] %s412_s12 }
  0x3c   : > { %s402_s23 = scalar_lea.sflag [#allocation7], %s5203_s27 }
  0x41   : > { %s5264_s15 = scalar_lea.hbm %s6064_s6, %s4311_s29  ;;  %s4984_s24 = scalar_lea.hbm %s6064_s6, 4096 }
  0x42   : > { %s4979_s21 = scalar_lea.hbm %s5264_s15, 1024  ;;  %p4985_p11 = scmp.lt.u32.totalorder %s5264_s15, %s6064_s6 }
  0x43   : > { %p4980_p6 = scmp.ne.s32.totalorder %s5264_s15, %s4979_s21  ;;  %p4986_p13 = scmp.lt.u32.totalorder %s4984_s24, %s4979_s21 }
  0x44   : > { %p4988_p2 = scmp.lt.u32.totalorder %s4979_s21, %s5264_s15 }
  0x45   : > { %p4982_p7 = pnand %p4980_p6, %p4951_p12  ;;  %p4987_p1 = por %p4986_p13, %p4985_p11 }
  0x47   : > { %p4983_p8 = pneg %p4982_p7  ;;  %p4989_p3 = por %p4988_p2, %p4987_p1 }
  0x49   : > { %p4990_p0 = pnand %p4989_p3, %p4983_p8 }
  0x4b   : > { %4993 = shalt.err (!%p4990_p0)
}
  0x4c   : > { %s4994_s19 = scalar_lea.vmem %s5266_s12, 1024  ;;  %s5084_s25 = smov [#allocation6]  }
  0x4d   : > { %p4995_p4 = scmp.ne.s32.totalorder %s5266_s12, %s4994_s19  ;;  %s4999_s11 = sshll.u32 %s5084_s25, 4  ;;  %s5000_s11 = int_to_ptr.vmem [resolvable:$false] %s4999_s11 }
  0x4e   : > { %s5001_s4 = scalar_lea.vmem %s5000_s11, 2048  ;;  %p5002_p9 = scmp.lt.s32.totalorder %s5266_s12, %s5000_s11 }
  0x4f   : > { %p4997_p6 = pnand %p4995_p4, %p4951_p12  ;;  %p5003_p11 = scmp.lt.s32.totalorder %s5001_s4, %s4994_s19 }
  0x51   : > { %p4998_p7 = pneg %p4997_p6  ;;  %p5004_p13 = por %p5003_p11, %p5002_p9 }
  0x53   : > { %p5005_p1 = pnand %p5004_p13, %p4998_p7 }
  0x55   : > { %5008 = shalt.err (!%p5005_p1)
}
  0x56   : > { %4716 = dma.hbm_to_vmem [thread:$0]  (!%p5210_p10), %s5264_s15, 1024, %s5266_s12, %s402_s23, %s5082_s22, %s5082_s22, %s5083_s26  }
  0x57   : > { %445 = sbr.rel (%p5256_p5) target bundleno = 3322 (0xcfa), region = 60  ;;  %s447_s21 = sand.u32 (!%p5256_p5), 1, %s5055_s14  }
  0x58   : > { %s4705_s24 = smul.u32 (!%p5256_p5), 320, %s447_s21  ;;  %s448_s29 = scalar_lea.sflag (!%p5256_p5), [#allocation5], %s447_s21 }
  0x59   : > { %p6065_p9 = scmp.ne.s32.totalorder (!%p5256_p5), %s6060_s28, 0 }
  0x5a   : > { %s5300_s19 = scalar_lea.vmem (!%p5256_p5), [#allocation4], %s4705_s24 }
  0x5e   : > { %5042 = dma.done.wait (%p6065_p9), %s448_s29, 5120  }
  0x5f   : > { %5044 = vsyncadd (%p6065_p9), %s448_s29, 4294962176  ;;  %s4001_s27 = sshll.u32 %s447_s21, 6  ;;  %s457_s30 = scalar_lea.sflag [#allocation7], %s447_s21 }
  0x60   : > { %s5306_s25 = scalar_lea.vmem [#allocation6], %s4001_s27 }
  0x61   : > { %5046 = dma.done.wait (%p6065_p9), %s457_s30, 1024  }
  0x62   : > { %5048 = vsyncadd (%p6065_p9), %s457_s30, 4294966272  ;;  %s4002_s15 = sshll.u32 %s5067_s17, 2  ;;  %p547_p10 = scmp.lt.s32.totalorder %s5063_s16, 3 }
  0x63   : > { %p536_p12 = scmp.lt.s32.totalorder %s4002_s15, 7  ;;  %p4013_p5 = scmp.ne.s32.totalorder %s5063_s16, 0 }
  0x64   : > { %s5315_s22 = scalar_select %p547_p10, %s5063_s16, 3 }
  0x65   : > { %s6092_s15 = smov (!%p536_p12, %s4002_s15), 7  ;;  %584 = sbr.rel (%p4013_p5) target bundleno = 109 (0x6d), region = 72 }
  0x66   : > { %s4006_s26 = sshll.u32 %s5315_s22, 1  ;;  %s4003_s23 = sshll.u32 %s6092_s15, 3  ;;  %vm589_vm0 = vcmask (!%p4013_p5), 64512   ;;  %vm594_vm1 = vcmask (!%p4013_p5), 253952   ;;  %v5085_v8 = vmov (!%p4013_p5), 0   ;;  %vm597_vm2 = vcmask (!%p4013_p5), 254977  }
  0x67   : > { %s5325_s17 = scalar_lea.vmem %s6034_s2, %s4006_s26  ;;  %s539_s29 = scalar_lea.vmem %s6032_s0, %s4003_s23  ;;  %595 = vst.msk [vmem:[#allocation3] sm:$0x1] (!%p4013_p5), %vm594_vm1, %v5085_v8  ;;  %596 = vst.msk [vmem:[#allocation3 + $0xc] sm:$0x1] (!%p4013_p5), %vm594_vm1, %v5085_v8 }
  0x68   : > { %s545_s6 = scalar_lea.vmem %s6033_s1, %s4003_s23  ;;  %s5336_s20 = scalar_lea.vmem %s6042_s10, %s4003_s23  ;;  %v585_v4 = vld [vmem:[%s539_s29] sm:$0xff] (!%p4013_p5)  ;;  %v586_v5 = vld [vmem:[%s539_s29 + $0x8] sm:$0xff] (!%p4013_p5)  ;;  %v587_v6 = vld [vmem:[%s539_s29 + $0x10] sm:$0xff] (!%p4013_p5)  ;;  %598 = vst.msk [vmem:[#allocation3 + $0x8] sm:$0x2] (!%p4013_p5), %vm597_vm2, %v5085_v8 }
  0x69   : > { %v577_v0 = vld [vmem:[%s545_s6] sm:$0xff]  ;;  %v578_v1 = vld [vmem:[%s545_s6 + $0x8] sm:$0xff]  ;;  %v579_v2 = vld [vmem:[%s545_s6 + $0x10] sm:$0xff]  ;;  %s4007_s15 = sshll.u32 %s5315_s22, 2  ;;  %s4312_s24 = sshll.u32 %s5315_s22, 4  ;;  %590 = vst.msk [vmem:[#allocation2] sm:$0xff] (!%p4013_p5), %vm589_vm0, %v585_v4 }
  0x6a   : > { %v580_v3 = vld [vmem:[%s545_s6 + $0x18] sm:$0xff]  ;;  %s5342_s12 = scalar_lea.vmem %s6037_s5, %s4007_s15  ;;  %s5347_s21 = scalar_lea.vmem %s6039_s7, %s4007_s15  ;;  %591 = vst.msk [vmem:[#allocation2 + $0x8] sm:$0xff] (!%p4013_p5), %vm589_vm0, %v586_v5  ;;  %592 = vst.msk [vmem:[#allocation2 + $0x10] sm:$0xff] (!%p4013_p5), %vm589_vm0, %v587_v6 }
  0x6b   : > { %s569_s18 = scalar_lea.vmem %s6041_s9, %s5315_s22  ;;  %s5357_s28 = scalar_lea.vmem %s6040_s8, %s4312_s24  ;;  %v588_v7 = vld [vmem:[%s539_s29 + $0x18] sm:$0xff] (!%p4013_p5)  ;;  %599 = vst.msk [vmem:[#allocation3 + $0x14] sm:$0x2] (!%p4013_p5), %vm597_vm2, %v5085_v8 }
  0x6c   : > { %593 = vst.msk [vmem:[#allocation2 + $0x18] sm:$0xff] %vm589_vm0, %v588_v7 }
  0x6d PF: > { %v606_v9 = vld [vmem:[%s5325_s17] sm:$0x3]  ;;  %vm621_vm3 = vcmask 1041408   ;;  %vm614_vm4 = vcmask 31744   ;;  %v5086_v17 = vmov 0   ;;  %v4791_v18 = vld [vmem:[%s5300_s19 + $0x10] sm:$0xff]   ;;  %s6066_s29 = scalar_lea.vmem %s6035_s3, %s5315_s22 }
  0x6e   : > { %4702 = vmatprep.subr.msk.bf16.mxu0 %vm621_vm3, %v606_v9  ;;  %v623_v12 = vsel %vm621_vm3, %v606_v9, 0  ;;  %4789 = vset.pattern.permute.xlu0 %v5086_v17  ;;  %v4792_v19 = vld [vmem:[%s5300_s19 + $0x18] sm:$0xff]   ;;  %v5368_v20 = vld [vmem:[%s5300_s19] sm:$0xff]   ;;  %v4014_v23 = vld [vmem:[%s6066_s29] ss:$0 sm:$0xff]  ;;  %vm710_vm5 = vcmask 1040384  }
  0x6f   : > { %4433 = vmatpush3.bf16.msra.mxu0 %v623_v12  ;;  %676 = vperm.xlu0 %4789, %v577_v0   ;;  %vm711_vm6 = vcmask 1044484   ;;  %vm729_vm7 = vcmask 257025   ;;  %vm731_vm9 = vcmask 257024   ;;  %vm733_vm10 = vcmask 253952   ;;  %s5087_s15 = smov 96   ;;  %p4308_p8 = scmp.ne.s32.totalorder %s5063_s16, 3 }
  0x70   : > { %4790 = vset.pattern.permute.xlu1 %v5086_v17  ;;  %4438 = vmatprep.subr.bf16.mxu1 %v4791_v18  ;;  %vm5402_vm8 = vmor %vm710_vm5, %vm711_vm6  ;;  %vm748_vm11 = vsmask.f32 3328  ;;  %vm749_vm12 = vsmask.f32 7440  ;;  %vm822_vm14 = vcmask 261120   ;;  %vm961_vm15 = vcmask 1042432  }
  0x71   : > { %v600_v10 = vld [vmem:[#allocation2] sm:$0xff]  ;;  %681 = vperm.xlu1 %4790, %v578_v1   ;;  %4439 = vmatpush3.bf16.msra.mxu1 %v4791_v18  ;;  %vm5438_vm13 = vmor %vm748_vm11, %vm749_vm12  ;;  %vm962_vm0 = vcmask 1046532   ;;  %vm1062_vm2 = vsmask.f32 2304  ;;  %vm1063_vm5 = vsmask.f32 6416 }
  0x72   : > { %v601_v11 = vld [vmem:[#allocation2 + $0x8] sm:$0xff]  ;;  %v602_v14 = vld [vmem:[#allocation2 + $0x10] sm:$0xff]  ;;  %4440 = vmatprep.subr.bf16.mxu1 %v4792_v19  ;;  %vm5460_vm1 = vmor %vm961_vm15, %vm962_vm0  ;;  %vm1200_vm11 = vcmask 1045508  }
  0x73   : > { %v604_v13 = vpack.c.bf16 %v601_v11, %v600_v10  ;;  %v603_v15 = vld [vmem:[#allocation2 + $0x18] sm:$0xff]  ;;  %686 = vperm.xlu0 %4789, %v579_v2   ;;  %vm5482_vm6 = vmor %vm1062_vm2, %vm1063_vm5 }
  0x74   : > { %v605_v16 = vpack.c.bf16 %v603_v15, %v602_v14  ;;  %vm5501_vm12 = vmor %vm621_vm3, %vm1200_vm11  ;;  %vm3787_vm3 = vcmask 64512  }
  0x75   : > { %4434 = vmatprep.mubr.msk.bf16.mxu0 %vm614_vm4, %v604_v13  ;;  %691 = vperm.xlu1 %4790, %v580_v3  }
  0x76   : > { %4435 = vmatmul.mubr.msk.bf16.vlgmr.msra.gmra.mrb[0].mxu0 %vm614_vm4, %v605_v16  ;;  %4441 = vmatpush3.bf16.msra.mxu1 %v4792_v19 }
  0x77   : > { %4446 = vmatprep.subr.bf16.mxu1 %v5368_v20 }
  0xee   : > { %v5371_v21 = vpop.permute.xlu0 %676 }
  0xf0   : > { %v5373_v22 = vpop.permute.xlu1 %681 }
  0xf2   : > { %v5380_v27 = vpop.permute.xlu0 %686 }
  0xf4   : > { %v5388_v34 = vpop.permute.xlu1 %691 }
 0x149   : > { %v4436_v24 = vpop.f32.mrb[0].mxu0 }
 0x14a   : > { %v668_v25 = vadd.f32 %v4436_v24, %v4014_v23  ;;  %v659_v26 = vpop.f32.mrb[1].mxu0 }
 0x14b   : > { %v660_v28 = vadd.f32 %v4014_v23, %v659_v26  ;;  %v4437_v29 = vpop.f32.mrb[2].mxu0 }
 0x14c   : > { %v5383_v30 = vmul.f32 %v5380_v27, %v668_v25  ;;  %v671_v31 = vadd.f32 %v4437_v29, %v4014_v23  ;;  %v662_v32 = vpop.f32.mrb[3].mxu0 }
 0x14d   : > { %v5386_v33 = vmul.f32 %v5371_v21, %v660_v28  ;;  %v663_v35 = vadd.f32 %v4014_v23, %v662_v32 }
 0x14e   : > { %v4315_v36 = vpack.c.bf16 %v5383_v30, %v5383_v30  ;;  %v5393_v37 = vmul.f32 %v5388_v34, %v671_v31 }
 0x14f   : > { %v4313_v38 = vpack.c.bf16 %v5386_v33, %v5386_v33  ;;  %v5398_v39 = vmul.f32 %v5373_v22, %v663_v35 }
 0x150   : > { %v718_v40 = vrot.slane %v4315_v36, 7  ;;  %v4316_v41 = vpack.c.bf16 %v5393_v37, %v5393_v37 }
 0x151   : > { %v713_v42 = vrot.slane %v4313_v38, 7  ;;  %v4314_v44 = vpack.c.bf16 %v5398_v39, %v5398_v39  ;;  %v4795_v38 = vld [vmem:[%s5300_s19 + $0x8] sm:$0xff]  }
 0x152   : > { %v719_v45 = vrot.slane %v718_v40, 4  ;;  %735 = vst.msk [vmem:[#allocation3 + $0xc] sm:$0xe] %vm729_vm7, %v718_v40  ;;  %v720_v46 = vrot.slane %v4316_v41, 7 }
 0x153   : > { %v714_v47 = vrot.slane %v713_v42, 4  ;;  %730 = vst.msk [vmem:[#allocation3] sm:$0xe] %vm729_vm7, %v713_v42  ;;  %v715_v48 = vrot.slane %v4314_v44, 7  ;;  %v4796_v42 = vld [vmem:[%s5300_s19 + $0x20] sm:$0xff]  }
 0x154   : > { %v721_v49 = vsel %vm5402_vm8, %v719_v45, %v720_v46  ;;  %v722_v50 = vrot.slane %v720_v46, 4 }
 0x155   : > { %736 = vst.msk [vmem:[#allocation3 + $0x10] sm:$0xf] %vm731_vm9, %v721_v49  ;;  %v716_v51 = vsel %vm5402_vm8, %v714_v47, %v715_v48  ;;  %v717_v52 = vrot.slane %v715_v48, 4 }
 0x156   : > { %737 = vst.msk [vmem:[#allocation3 + $0x14] sm:$0x1] %vm733_vm10, %v722_v50 }
 0x157   : > { %732 = vst.msk [vmem:[#allocation3 + $0x4] sm:$0xf] %vm731_vm9, %v716_v51 }
 0x158   : > { %734 = vst.msk [vmem:[#allocation3 + $0x8] sm:$0x1] %vm733_vm10, %v717_v52 }
 0x159   : > { %v5418_v53 = vld [vmem:[#allocation3 + $0xc] sm:$0xf] }
 0x15a   : > { %v738_v54 = vld [vmem:[#allocation3] sm:$0xf]  ;;  %v776_v55 = vshrl.u32 %v5418_v53, 16  ;;  %v779_v56 = vshll.u32 %v5418_v53, 16 }
 0x15b   : > { %v752_v57 = vshrl.u32 %v738_v54, 16  ;;  %v755_v58 = vshll.u32 %v738_v54, 16  ;;  %v955_v44 = vld [vmem:[#allocation3] sm:$0xe] }
 0x15c   : > { %v5422_v59 = vld [vmem:[#allocation3 + $0x10] sm:$0xf]  ;;  %v778_v60 = vrot.slane %v776_v55, 4  ;;  %v781_v61 = vrot.slane %v779_v56, 5  ;;  %v1066_v48 = vshrl.u32 %v955_v44, 16  ;;  %v1069_v49 = vshll.u32 %v955_v44, 16 }
 0x15d   : > { %v754_v63 = vrot.slane %v752_v57, 4  ;;  %v757_v0 = vrot.slane %v755_v58, 5  ;;  %v785_v4 = vshll.u32 %v5422_v59, 16  ;;  %v5429_v6 = vld [vmem:[#allocation3 + $0x14] sm:$0x1]  ;;  %v789_v7 = vshrl.u32 %v5422_v59, 16 }
 0x15e   : > { %v5424_v62 = vld [vmem:[#allocation3 + $0x4] sm:$0xf]  ;;  %v782_v11 = vor.u32 %v781_v61, %v778_v60  ;;  %v795_v16 = vshll.u32 %v5429_v6, 16  ;;  %v4032_v57 = vcombine.low %v5418_v53, %v5422_v59  ;;  %v1068_v61 = vrot.slane %v1066_v48, 5  ;;  %v956_v53 = vld [vmem:[#allocation3 + $0xc] sm:$0xe] }
 0x15f   : > { %v746_v1 = vld [vmem:[#allocation3 + $0x8] sm:$0x1]  ;;  %v761_v2 = vshll.u32 %v5424_v62, 16  ;;  %v765_v3 = vshrl.u32 %v5424_v62, 16  ;;  %v758_v5 = vor.u32 %v757_v0, %v754_v63  ;;  %v787_v12 = vrot.slane %v785_v4, 5  ;;  %v4798_v60 = vld [vmem:[%s5300_s19 + $0x28] sm:$0xff]  }
 0x160   : > { %v771_v10 = vshll.u32 %v746_v1, 16  ;;  %v791_v15 = vrot.slane %v789_v7, 4  ;;  %v783_v23 = vrot.slane %v782_v11, 4  ;;  %v797_v29 = vrot.slane %v795_v16, 5  ;;  %v5458_v47 = vld [vmem:[#allocation3 + $0x8] sm:$0x3] }
 0x161   : > { %v763_v8 = vrot.slane %v761_v2, 5  ;;  %v767_v9 = vrot.slane %v765_v3, 4  ;;  %v759_v13 = vrot.slane %v758_v5, 4  ;;  %v4031_v40 = vcombine.low %v738_v54, %v5424_v62 }
 0x162   : > { %v773_v19 = vrot.slane %v771_v10, 5  ;;  %v792_v24 = vor.u32 %v791_v15, %v787_v12  ;;  %v788_v32 = vsel %vm5438_vm13, %v783_v23, %v787_v12  ;;  %v966_v41 = vrot.slane %v5424_v62, 5 }
 0x163   : > { %v768_v14 = vor.u32 %v767_v9, %v763_v8  ;;  %v764_v25 = vsel %vm5438_vm13, %v759_v13, %v763_v8  ;;  %v969_v46 = vrot.slane %v746_v1, 5  ;;  %v1074_v50 = vrot.slane %v765_v3, 5  ;;  %v4799_v8 = vld [vmem:[%s5300_s19 + $0x30] sm:$0xff]  }
 0x164   : > { %v793_v28 = vrot.slane %v792_v24, 4  ;;  %v968_v45 = vrot.slane %v966_v41, 4  ;;  %v1075_v52 = vrot.slane %v761_v2, 6  ;;  %v1080_v55 = vshrl.u32 %v5458_v47, 16 }
 0x165   : > { %v769_v18 = vrot.slane %v768_v14, 4  ;;  %v1083_v56 = vshll.u32 %v5458_v47, 16  ;;  %v1071_v63 = vrot.slane %v1069_v49, 6  ;;  %v973_v1 = vrot.slane %v5422_v59, 5  ;;  %v1061_v14 = vld [vmem:[#allocation3 + $0x14] sm:$0x3] }
 0x166   : > { %v798_v35 = vsel %vm5438_vm13, %v793_v28, %v797_v29  ;;  %v970_v54 = vsel %vm5460_vm1, %v968_v45, %v969_v46  ;;  %v1076_v2 = vor.u32 %v1075_v52, %v1074_v50  ;;  %v1082_v3 = vrot.slane %v1080_v55, 5  ;;  %v4801_v46 = vld [vmem:[%s5300_s19 + $0x40] sm:$0xff]  }
 0x167   : > { %v774_v26 = vsel %vm5438_vm13, %v769_v18, %v773_v19  ;;  %v4026_v36 = vcombine.low %v788_v32, %v798_v35  ;;  %v1085_v5 = vrot.slane %v1083_v56, 6  ;;  %v1072_v9 = vor.u32 %v1071_v63, %v1068_v61  ;;  %v4802_v61 = vld [vmem:[%s5300_s19 + $0x48] sm:$0xff]  }
 0x168   : > { %v4025_v31 = vcombine.low %v764_v25, %v774_v26  ;;  %v975_v10 = vrot.slane %v973_v1, 4  ;;  %v976_v11 = vrot.slane %v5429_v6, 5  ;;  %v1078_v12 = vrot.slane %v1076_v2, 4 }
 0x169   : > { %v1086_v13 = vor.u32 %v1085_v5, %v1082_v3  ;;  %v1089_v15 = vshrl.u32 %v956_v53, 16  ;;  %v1092_v16 = vshll.u32 %v956_v53, 16  ;;  %v1098_v18 = vrot.slane %v785_v4, 6  ;;  %v1194_v3 = vld [vmem:[#allocation3 + $0xc] sm:$0xc] }
 0x16a   : > { %4442 = vmatprep.mubr.msk.bf16.mxu1 %vm822_vm14, %v4025_v31  ;;  %v4038_v19 = vrot.slane %v956_v53, 9  ;;  %v1073_v23 = vrot.slane %v1072_v9, 4  ;;  %v977_v24 = vsel %vm5460_vm1, %v975_v10, %v976_v11  ;;  %v1097_v25 = vrot.slane %v789_v7, 5 }
 0x16b   : > { %4443 = vmatmul.mubr.msk.bf16.vlgmr.msra.gmra.mrb[0].mxu1 %vm822_vm14, %v4026_v36  ;;  %v1103_v26 = vshrl.u32 %v1061_v14, 16  ;;  %v1106_v28 = vshll.u32 %v1061_v14, 16  ;;  %v1087_v29 = vsel %vm5482_vm6, %v1078_v12, %v1086_v13  ;;  %v1091_v31 = vrot.slane %v1089_v15, 5 }
 0x16c   : > { %4447 = vmatpush3.bf16.msra.mxu1 %v5368_v20  ;;  %4450 = vmatprep.mubr.msk.bf16.mxu1 %vm822_vm14, %v4031_v40  ;;  %v4037_v20 = vrot.slane %v955_v44, 9  ;;  %v974_v4 = vsel %vm5460_vm1, %v4038_v19, %v973_v1  ;;  %v1094_v32 = vrot.slane %v1092_v16, 6  ;;  %v1077_v36 = vsel %vm5482_vm6, %v1073_v23, %v1076_v2 }
 0x16d   : > { %4448 = vmatprep.subr.bf16.mxu1 %v4795_v38  ;;  %v4044_v35 = vcombine.low %v974_v4, %v977_v24  ;;  %v4053_v40 = vcombine.low %v1077_v36, %v1087_v29  ;;  %v1108_v7 = vrot.slane %v1106_v28, 6  ;;  %v1204_v44 = vrot.slane %v5424_v62, 6  ;;  %v4803_v4 = vld [vmem:[%s5306_s25] sm:$0xff]  }
 0x16e   : > { %v967_v58 = vsel %vm5460_vm1, %v4037_v20, %v966_v41  ;;  %v1099_v41 = vor.u32 %v1098_v18, %v1097_v25  ;;  %v1095_v45 = vor.u32 %v1094_v32, %v1091_v31  ;;  %v1207_v20 = vrot.slane %v5458_v47, 6  ;;  %4478 = vmatprep.subr.bf16.mxu0 %v4803_v4 }
 0x16f   : > { %v4043_v0 = vcombine.low %v967_v58, %v970_v54  ;;  %v1206_v50 = vrot.slane %v1204_v44, 4  ;;  %v1193_v54 = vld [vmem:[#allocation3] sm:$0xc]  ;;  %v1214_v2 = vrot.slane %v1061_v14, 6  ;;  %v4060_v5 = vrot.slane %v1194_v3, 10  ;;  %4479 = vmatpush3.bf16.msra.mxu0 %v4803_v4 }
 0x170   : > { %4449 = vmatpush3.bf16.msra.mxu1 %v4795_v38  ;;  %v4800_v38 = vld [vmem:[%s5300_s19 + $0x38] sm:$0xff]   ;;  %v1101_v48 = vrot.slane %v1099_v41, 4  ;;  %v1096_v52 = vrot.slane %v1095_v45, 4  ;;  %v4059_v56 = vrot.slane %v1193_v54, 10 }
 0x171   : > { %4454 = vmatprep.subr.bf16.mxu1 %v4796_v42 }
 0x172   : > { %v1100_v58 = vsel %vm5482_vm6, %v1096_v52, %v1099_v41 }
 0x177   : > { %4451 = vmatmul.mubr.msk.bf16.vlgmr.msra.gmra.mrb[0].mxu1 %vm822_vm14, %v4032_v57  ;;  %v1208_v57 = vsel %vm5501_vm12, %v1206_v50, %v1207_v20 }
 0x178   : > { %4455 = vmatpush3.bf16.msra.mxu1 %v4796_v42  ;;  %4458 = vmatprep.mubr.msk.bf16.mxu1 %vm822_vm14, %v4043_v0  ;;  %v1105_v42 = vrot.slane %v1103_v26, 5  ;;  %v1211_v0 = vrot.slane %v5422_v59, 6  ;;  %v4071_v59 = vld [vmem:[%s5342_s12] ss:$0 sm:$0xff] }
 0x179   : > { %4456 = vmatprep.subr.bf16.mxu1 %v4798_v60 }
 0x17a   : > { %v1109_v49 = vor.u32 %v1108_v7, %v1105_v42  ;;  %v1213_v1 = vrot.slane %v1211_v0, 4  ;;  %v1212_v53 = vsel %vm5501_vm12, %v4060_v5, %v1211_v0  ;;  %v5534_v0 = vld [vmem:[%s5300_s19 + $0x50] sm:$0xff]  }
 0x17c   : > { %4457 = vmatpush3.bf16.msra.mxu1 %v4798_v60  ;;  %v1110_v55 = vsel %vm5482_vm6, %v1101_v48, %v1109_v49  ;;  %v1205_v60 = vsel %vm5501_vm12, %v4059_v56, %v1204_v44 }
 0x17d   : > { %4462 = vmatprep.subr.bf16.mxu1 %v4799_v8  ;;  %v4054_v47 = vcombine.low %v1100_v58, %v1110_v55  ;;  %v4065_v63 = vcombine.low %v1205_v60, %v1208_v57 }
 0x183   : > { %4459 = vmatmul.mubr.msk.bf16.vlgmr.msra.gmra.mrb[0].mxu1 %vm822_vm14, %v4044_v35 }
 0x184   : > { %4463 = vmatpush3.bf16.msra.mxu1 %v4799_v8  ;;  %4466 = vmatprep.mubr.msk.bf16.mxu1 %vm822_vm14, %v4053_v40  ;;  %v1215_v8 = vsel %vm5501_vm12, %v1213_v1, %v1214_v2  ;;  %v4804_v40 = vld [vmem:[%s5306_s25 + $0x8] sm:$0xff]  }
 0x185   : > { %4464 = vmatprep.subr.bf16.mxu1 %v4800_v38  ;;  %v4066_v9 = vcombine.low %v1212_v53, %v1215_v8  ;;  %4480 = vmatprep.subr.bf16.mxu0 %v4804_v40  ;;  %v4076_v1 = vld [vmem:[%s5347_s21] ss:$0 sm:$0xff] }
 0x186   : > { %4481 = vmatpush3.bf16.msra.mxu0 %v4804_v40 }
 0x188   : > { %4465 = vmatpush3.bf16.msra.mxu1 %v4800_v38 }
 0x189   : > { %4470 = vmatprep.subr.bf16.mxu1 %v4801_v46 }
 0x18f   : > { %4467 = vmatmul.mubr.msk.bf16.vlgmr.msra.gmra.mrb[0].mxu1 %vm822_vm14, %v4054_v47 }
 0x190   : > { %4471 = vmatpush3.bf16.msra.mxu1 %v4801_v46  ;;  %4474 = vmatprep.mubr.msk.bf16.mxu1 %vm822_vm14, %v4065_v63  ;;  %v4806_v63 = vld [vmem:[%s5300_s19 + $0x68] sm:$0xff]  }
 0x191   : > { %4472 = vmatprep.subr.bf16.mxu1 %v4802_v61 }
 0x194   : > { %4473 = vmatpush3.bf16.msra.mxu1 %v4802_v61  ;;  %v4805_v61 = vld [vmem:[%s5300_s19 + $0x60] sm:$0xff]  }
 0x195   : > { %4486 = vmatprep.subr.bf16.mxu0 %v4805_v61 }
 0x19b   : > { %4475 = vmatmul.mubr.msk.bf16.vlgmr.msra.gmra.mrb[0].mxu1 %vm822_vm14, %v4066_v9 }
 0x26e   : > { %v4476_v10 = vpop.f32.mrb[0].mxu1 }
 0x26f   : > { %v1307_v11 = vadd.f32 %v4476_v10, %v4071_v59  ;;  %v1279_v12 = vpop.f32.mrb[1].mxu1 }
 0x270   : > { %v1305_v13 = vadd.f32 %v4071_v59, %v1279_v12  ;;  %v4477_v15 = vpop.f32.mrb[2].mxu1 }
 0x271   : > { %v4074_v14 = vmul.f32 -1.442695, %v1307_v11  ;;  %v1308_v16 = vadd.f32 %v4477_v15, %v4071_v59  ;;  %v1282_v18 = vpop.f32.mrb[3].mxu1 }
 0x272   : > { %v4072_v19 = vmul.f32 -1.442695, %v1305_v13  ;;  %v1306_v23 = vadd.f32 %v4071_v59, %v1282_v18 }
 0x273   : > { %4849 = vpow2.f32 %v4074_v14  ;;  %v4075_v24 = vmul.f32 -1.442695, %v1308_v16 }
 0x274   : > { %4851 = vpow2.f32 %v4072_v19  ;;  %v4073_v25 = vmul.f32 -1.442695, %v1306_v23 }
 0x275   : > { %4853 = vpow2.f32 %v4075_v24 }
 0x276   : > { %4855 = vpow2.f32 %v4073_v25 }
 0x27d   : > { %v4850_v26 = vpop.eup %4849 }
 0x27e   : > { %v4852_v28 = vpop.eup %4851  ;;  %v1327_v31 = vadd.f32 1.0, %v4850_v26 }
 0x27f   : > { %v1325_v29 = vadd.f32 1.0, %v4852_v28  ;;  %v4854_v32 = vpop.eup %4853 }
 0x280   : > { %v4856_v35 = vpop.eup %4855  ;;  %v1328_v38 = vadd.f32 1.0, %v4854_v32 }
 0x281   : > { %4857 = vrcp.f32 %v1325_v29  ;;  %v1326_v36 = vadd.f32 1.0, %v4856_v35 }
 0x282   : > { %4859 = vrcp.f32 %v1327_v31 }
 0x283   : > { %4861 = vrcp.f32 %v1326_v36 }
 0x284   : > { %4863 = vrcp.f32 %v1328_v38 }
 0x285   : > { %4865 = vtanh.f32 %v1305_v13 }
 0x286   : > { %4867 = vtanh.f32 %v1306_v23 }
 0x287   : > { %4869 = vtanh.f32 %v1307_v11 }
 0x288   : > { %4871 = vtanh.f32 %v1308_v16 }
 0x28b   : > { %v4858_v41 = vpop.eup %4857 }
 0x28c   : > { %1341 = vrot.lane.b32.xlu0 %v4858_v41, %s5087_s15  ;;  %v4860_v42 = vpop.eup %4859 }
 0x28d   : > { %v4862_v7 = vpop.eup %4861 }
 0x28e   : > { %1343 = vrot.lane.b32.xlu1 %v4862_v7, %s5087_s15  ;;  %v4864_v44 = vpop.eup %4863 }
 0x28f   : > { %v4866_v46 = vpop.eup %4865 }
 0x290   : > { %1345 = vrot.lane.b32.xlu0 %v4860_v42, %s5087_s15  ;;  %v4868_v48 = vpop.eup %4867 }
 0x291   : > { %v4870_v54 = vpop.eup %4869 }
 0x292   : > { %1347 = vrot.lane.b32.xlu1 %v4864_v44, %s5087_s15  ;;  %v4872_v56 = vpop.eup %4871 }
 0x2fe   : > { %v1342_v45 = vpop.permute.xlu0 %1341 }
 0x2ff   : > { %v1353_v50 = vmul.f32 %v4866_v46, %v1342_v45 }
 0x300   : > { %v1344_v49 = vpop.permute.xlu1 %1343 }
 0x301   : > { %v1354_v20 = vmul.f32 %v4868_v48, %v1344_v49 }
 0x302   : > { %v1346_v52 = vpop.permute.xlu0 %1345 }
 0x303   : > { %v1357_v55 = vpack.c.bf16 %v1354_v20, %v1353_v50  ;;  %v1355_v58 = vmul.f32 %v4870_v54, %v1346_v52 }
 0x304   : > { %v1348_v57 = vpop.permute.xlu1 %1347 }
 0x305   : > { %v1356_v47 = vmul.f32 %v4872_v56, %v1348_v57  ;;  %4482 = vmatprep.mubr.msk.bf16.mxu0 %vm822_vm14, %v1357_v55 }
 0x307   : > { %v1358_v60 = vpack.c.bf16 %v1356_v47, %v1355_v58 }
 0x309   : > { %4483 = vmatmul.mubr.msk.bf16.vlgmr.msra.gmra.mrb[4].mxu0 %vm822_vm14, %v1358_v60 }
 0x30a   : > { %4487 = vmatpush3.bf16.msra.mxu0 %v4805_v61 }
 0x30b   : > { %4488 = vmatprep.subr.bf16.mxu0 %v4806_v63 }
 0x30e   : > { %4489 = vmatpush3.bf16.msra.mxu0 %v4806_v63 }
 0x30f   : > { %4494 = vmatprep.subr.bf16.mxu0 %v5534_v0 }
 0x3dc   : > { %v4484_v2 = vpop.f32.mrb[4].mxu0 }
 0x3dd   : > { %v5538_v3 = vadd.f32 %v4484_v2, %v4076_v1  ;;  %v1422_v5 = vpop.f32.mrb[5].mxu0 }
 0x3de   : > { %v5540_v8 = vadd.f32 %v4076_v1, %v1422_v5  ;;  %v4485_v53 = vpop.f32.mrb[6].mxu0 }
 0x3df   : > { %v1439_v9 = vadd.f32 %v5538_v3, %v5383_v30  ;;  %v5544_v59 = vadd.f32 %v4485_v53, %v4076_v1  ;;  %v1425_v10 = vpop.f32.mrb[7].mxu0 }
 0x3e0   : > { %v1437_v11 = vadd.f32 %v5540_v8, %v5386_v33  ;;  %v5548_v12 = vadd.f32 %v4076_v1, %v1425_v10 }
 0x3e1   : > { %v5551_v13 = vmul.f32 %v1439_v9, %v5380_v27  ;;  %v1440_v15 = vadd.f32 %v5544_v59, %v5393_v37 }
 0x3e2   : > { %v5556_v14 = vmul.f32 %v1437_v11, %v5371_v21  ;;  %v1438_v30 = vadd.f32 %v5548_v12, %v5398_v39 }
 0x3e3   : > { %v4319_v16 = vpack.c.bf16 %v5551_v13, %v5551_v13  ;;  %v5563_v18 = vmul.f32 %v1440_v15, %v5388_v34 }
 0x3e4   : > { %v4317_v33 = vpack.c.bf16 %v5556_v14, %v5556_v14  ;;  %v5568_v19 = vmul.f32 %v1438_v30, %v5373_v22 }
 0x3e5   : > { %v1466_v23 = vrot.slane %v4319_v16, 7  ;;  %v4320_v37 = vpack.c.bf16 %v5563_v18, %v5563_v18 }
 0x3e6   : > { %v1461_v24 = vrot.slane %v4317_v33, 7  ;;  %v4318_v39 = vpack.c.bf16 %v5568_v19, %v5568_v19 }
 0x3e7   : > { %v1467_v25 = vrot.slane %v1466_v23, 4  ;;  %1480 = vst.msk [vmem:[#allocation3 + $0xc] sm:$0xe] %vm729_vm7, %v1466_v23  ;;  %v1468_v26 = vrot.slane %v4320_v37, 7 }
 0x3e8   : > { %v1462_v28 = vrot.slane %v1461_v24, 4  ;;  %1477 = vst.msk [vmem:[#allocation3] sm:$0xe] %vm729_vm7, %v1461_v24  ;;  %v1463_v29 = vrot.slane %v4318_v39, 7 }
 0x3e9   : > { %v1469_v4 = vsel %vm5402_vm8, %v1467_v25, %v1468_v26  ;;  %v1470_v31 = vrot.slane %v1468_v26, 4 }
 0x3ea   : > { %1481 = vst.msk [vmem:[#allocation3 + $0x10] sm:$0xf] %vm731_vm9, %v1469_v4  ;;  %v1464_v32 = vsel %vm5402_vm8, %v1462_v28, %v1463_v29  ;;  %v1465_v35 = vrot.slane %v1463_v29, 4  ;;  %v4809_v28 = vld [vmem:[%s5300_s19 + $0x58] sm:$0xff]  }
 0x3eb   : > { %1482 = vst.msk [vmem:[#allocation3 + $0x14] sm:$0x1] %vm733_vm10, %v1470_v31  ;;  %v4810_v31 = vld [vmem:[%s5300_s19 + $0x70] sm:$0xff]  }
 0x3ec   : > { %1478 = vst.msk [vmem:[#allocation3 + $0x4] sm:$0xf] %vm731_vm9, %v1464_v32 }
 0x3ed   : > { %1479 = vst.msk [vmem:[#allocation3 + $0x8] sm:$0x1] %vm733_vm10, %v1465_v35 }
 0x3ee   : > { %v5584_v36 = vld [vmem:[#allocation3 + $0xc] sm:$0xf] }
 0x3ef   : > { %v1483_v38 = vld [vmem:[#allocation3] sm:$0xf]  ;;  %v1519_v40 = vshrl.u32 %v5584_v36, 16  ;;  %v1522_v41 = vshll.u32 %v5584_v36, 16 }
 0x3f0   : > { %v1495_v42 = vshrl.u32 %v1483_v38, 16  ;;  %v1498_v7 = vshll.u32 %v1483_v38, 16  ;;  %v1697_v32 = vld [vmem:[#allocation3] sm:$0xe] }
 0x3f1   : > { %v5588_v44 = vld [vmem:[#allocation3 + $0x10] sm:$0xf]  ;;  %v1521_v45 = vrot.slane %v1519_v40, 4  ;;  %v1524_v46 = vrot.slane %v1522_v41, 5 }
 0x3f2   : > { %v1497_v49 = vrot.slane %v1495_v42, 4  ;;  %v1500_v50 = vrot.slane %v1498_v7, 5  ;;  %v5592_v20 = vld [vmem:[#allocation3 + $0x14] sm:$0x1]  ;;  %v1528_v56 = vshll.u32 %v5588_v44, 16  ;;  %v1532_v47 = vshrl.u32 %v5588_v44, 16 }
 0x3f3   : > { %v5590_v48 = vld [vmem:[#allocation3 + $0x4] sm:$0xf]  ;;  %v1525_v58 = vor.u32 %v1524_v46, %v1521_v45  ;;  %v1538_v5 = vshll.u32 %v5592_v20, 16  ;;  %v1802_v42 = vshrl.u32 %v1697_v32, 16  ;;  %v4105_v7 = vrot.slane %v1697_v32, 9 }
 0x3f4   : > { %v1492_v52 = vld [vmem:[#allocation3 + $0x8] sm:$0x1]  ;;  %v1504_v54 = vshll.u32 %v5590_v48, 16  ;;  %v1508_v55 = vshrl.u32 %v5590_v48, 16  ;;  %v1501_v57 = vor.u32 %v1500_v50, %v1497_v49  ;;  %v1530_v1 = vrot.slane %v1528_v56, 5 }
 0x3f5   : > { %v1514_v63 = vshll.u32 %v1492_v52, 16  ;;  %v1534_v2 = vrot.slane %v1532_v47, 4  ;;  %v1526_v10 = vrot.slane %v1525_v58, 4  ;;  %v1540_v33 = vrot.slane %v1538_v5, 5  ;;  %v5619_v41 = vld [vmem:[#allocation3 + $0x8] sm:$0x3] }
 0x3f6   : > { %v1506_v60 = vrot.slane %v1504_v54, 5  ;;  %v1510_v61 = vrot.slane %v1508_v55, 4  ;;  %v1502_v53 = vrot.slane %v1501_v57, 4  ;;  %v4099_v29 = vcombine.low %v1483_v38, %v5590_v48  ;;  %v4812_v58 = vld [vmem:[%s5300_s19 + $0x78] sm:$0xff]   ;;  %v4813_v5 = vld [vmem:[%s5300_s19 + $0x80] sm:$0xff]  }
 0x3f7   : > { %v1535_v11 = vor.u32 %v1534_v2, %v1530_v1  ;;  %v1516_v30 = vrot.slane %v1514_v63, 5  ;;  %v1531_v39 = vsel %vm5438_vm13, %v1526_v10, %v1530_v1  ;;  %v1705_v4 = vrot.slane %v5590_v48, 5 }
 0x3f8   : > { %v1511_v9 = vor.u32 %v1510_v61, %v1506_v60  ;;  %v1507_v23 = vsel %vm5438_vm13, %v1502_v53, %v1506_v60  ;;  %v1708_v40 = vrot.slane %v1492_v52, 5  ;;  %v1805_v38 = vshll.u32 %v1697_v32, 16 }
 0x3f9   : > { %v1536_v16 = vrot.slane %v1535_v11, 4  ;;  %v1707_v35 = vrot.slane %v1705_v4, 4  ;;  %v1810_v46 = vrot.slane %v1508_v55, 5  ;;  %v1816_v49 = vshrl.u32 %v5619_v41, 16 }
 0x3fa   : > { %v1512_v15 = vrot.slane %v1511_v9, 4  ;;  %v1819_v50 = vshll.u32 %v5619_v41, 16  ;;  %v4100_v52 = vcombine.low %v5584_v36, %v5588_v44  ;;  %v1706_v57 = vsel %vm5460_vm1, %v4105_v7, %v1705_v4  ;;  %v1698_v36 = vld [vmem:[#allocation3 + $0xc] sm:$0xe] }
 0x3fb   : > { %v1541_v25 = vsel %vm5438_vm13, %v1536_v16, %v1540_v33  ;;  %v1709_v45 = vsel %vm5460_vm1, %v1707_v35, %v1708_v40  ;;  %v1712_v60 = vrot.slane %v5588_v44, 5  ;;  %v1804_v61 = vrot.slane %v1802_v42, 5  ;;  %v4814_v40 = vld [vmem:[%s5300_s19 + $0x88] sm:$0xff]  }
 0x3fc   : > { %v1517_v37 = vsel %vm5438_vm13, %v1512_v15, %v1516_v30  ;;  %v4094_v26 = vcombine.low %v1531_v39, %v1541_v25  ;;  %v1807_v63 = vrot.slane %v1805_v38, 6  ;;  %v4111_v1 = vcombine.low %v1706_v57, %v1709_v45  ;;  %v1800_v30 = vld [vmem:[#allocation3 + $0x14] sm:$0x3] }
 0x3fd   : > { %v4093_v24 = vcombine.low %v1507_v23, %v1517_v37  ;;  %v1818_v55 = vrot.slane %v1816_v49, 5  ;;  %v1821_v2 = vrot.slane %v1819_v50, 6  ;;  %v1714_v53 = vrot.slane %v1712_v60, 4 }
 0x3fe   : > { %v1715_v9 = vrot.slane %v5592_v20, 5  ;;  %v1808_v10 = vor.u32 %v1807_v63, %v1804_v61  ;;  %v1825_v16 = vshrl.u32 %v1698_v36, 16  ;;  %v1828_v33 = vshll.u32 %v1698_v36, 16 }
 0x3ff   : > { %4490 = vmatprep.mubr.msk.bf16.mxu0 %vm822_vm14, %v4093_v24  ;;  %v1822_v15 = vor.u32 %v1821_v2, %v1818_v55  ;;  %v4106_v23 = vrot.slane %v1698_v36, 9  ;;  %v1833_v39 = vrot.slane %v1532_v47, 5  ;;  %v1834_v20 = vrot.slane %v1528_v56, 6  ;;  %v4816_v55 = vld [vmem:[%s5300_s19 + $0x98] sm:$0xff]  }
 0x400   : > { %4491 = vmatmul.mubr.msk.bf16.vlgmr.msra.gmra.mrb[8].mxu0 %vm822_vm14, %v4094_v26  ;;  %v1716_v37 = vsel %vm5460_vm1, %v1714_v53, %v1715_v9  ;;  %v1809_v24 = vrot.slane %v1808_v10, 4  ;;  %v1839_v25 = vshrl.u32 %v1800_v30, 16  ;;  %v1842_v26 = vshll.u32 %v1800_v30, 16  ;;  %v1930_v53 = vld [vmem:[#allocation3 + $0xc] sm:$0xc] }
 0x401   : > { %4495 = vmatpush3.bf16.msra.mxu0 %v5534_v0  ;;  %4498 = vmatprep.mubr.msk.bf16.mxu0 %vm822_vm14, %v4099_v29  ;;  %v1811_v0 = vrot.slane %v1504_v54, 6  ;;  %v1713_v29 = vsel %vm5460_vm1, %v4106_v23, %v1712_v60  ;;  %v1827_v4 = vrot.slane %v1825_v16, 5  ;;  %v1835_v42 = vor.u32 %v1834_v20, %v1833_v39 }
 0x402   : > { %4496 = vmatprep.subr.bf16.mxu0 %v4809_v28  ;;  %v4112_v32 = vcombine.low %v1713_v29, %v1716_v37  ;;  %v1841_v38 = vrot.slane %v1839_v25, 5  ;;  %v1844_v56 = vrot.slane %v1842_v26, 6  ;;  %v1937_v7 = vrot.slane %v5590_v48, 6 }
 0x403   : > { %v1812_v54 = vor.u32 %v1811_v0, %v1810_v46  ;;  %v4815_v46 = vld [vmem:[%s5300_s19 + $0x90] sm:$0xff]   ;;  %v1837_v0 = vrot.slane %v1835_v42, 4  ;;  %v1944_v2 = vrot.slane %v5588_v44, 6  ;;  %v1947_v36 = vrot.slane %v1800_v30, 6  ;;  %v4140_v44 = vld [vmem:[%s5342_s12 + $0x1] ss:$0 sm:$0xff] }
 0x404   : > { %v1845_v49 = vor.u32 %v1844_v56, %v1841_v38  ;;  %v1939_v50 = vrot.slane %v1937_v7, 4  ;;  %v4128_v9 = vrot.slane %v1930_v53, 10  ;;  %v4820_v53 = vld [vmem:[%s5300_s19 + $0xb8] sm:$0xff]  }
 0x405   : > { %4497 = vmatpush3.bf16.msra.mxu0 %v4809_v28  ;;  %v1814_v11 = vrot.slane %v1812_v54, 4  ;;  %v1813_v35 = vsel %vm5482_vm6, %v1809_v24, %v1812_v54 }
 0x406   : > { %4502 = vmatprep.subr.bf16.mxu0 %v4810_v31  ;;  %v1846_v60 = vsel %vm5482_vm6, %v1837_v0, %v1845_v49 }
 0x407   : > { %v1823_v28 = vsel %vm5482_vm6, %v1814_v11, %v1822_v15  ;;  %v1945_v11 = vsel %vm5501_vm12, %v4128_v9, %v1944_v2  ;;  %v5682_v9 = vld [vmem:[%s5300_s19 + $0xa0] sm:$0xff]  }
 0x408   : > { %v4121_v47 = vcombine.low %v1813_v35, %v1823_v28  ;;  %v4817_v35 = vld [vmem:[%s5306_s25 + $0x10] sm:$0xff]  }
 0x409   : > { %4526 = vmatprep.subr.bf16.mxu1 %v4817_v35 }
 0x40a   : > { %4527 = vmatpush3.bf16.msra.mxu1 %v4817_v35 }
 0x40c   : > { %4499 = vmatmul.mubr.msk.bf16.vlgmr.msra.gmra.mrb[8].mxu0 %vm822_vm14, %v4100_v52  ;;  %v1940_v52 = vrot.slane %v5619_v41, 6 }
 0x40d   : > { %4503 = vmatpush3.bf16.msra.mxu0 %v4810_v31  ;;  %4506 = vmatprep.mubr.msk.bf16.mxu0 %vm822_vm14, %v4111_v1  ;;  %v1830_v31 = vrot.slane %v1828_v33, 6 }
 0x40e   : > { %4504 = vmatprep.subr.bf16.mxu0 %v4812_v58  ;;  %v1941_v61 = vsel %vm5501_vm12, %v1939_v50, %v1940_v52 }
 0x40f   : > { %v1831_v45 = vor.u32 %v1830_v31, %v1827_v4 }
 0x411   : > { %4505 = vmatpush3.bf16.msra.mxu0 %v4812_v58  ;;  %v1832_v57 = vrot.slane %v1831_v45, 4  ;;  %v1929_v58 = vld [vmem:[#allocation3] sm:$0xc] }
 0x412   : > { %4510 = vmatprep.subr.bf16.mxu0 %v4813_v5  ;;  %v4127_v48 = vrot.slane %v1929_v58, 10 }
 0x413   : > { %v1836_v63 = vsel %vm5482_vm6, %v1832_v57, %v1835_v42 }
 0x414   : > { %v4122_v1 = vcombine.low %v1836_v63, %v1846_v60  ;;  %v1938_v54 = vsel %vm5501_vm12, %v4127_v48, %v1937_v7  ;;  %v4818_v7 = vld [vmem:[%s5306_s25 + $0x18] sm:$0xff]  }
 0x415   : > { %v4133_v41 = vcombine.low %v1938_v54, %v1941_v61  ;;  %4528 = vmatprep.subr.bf16.mxu1 %v4818_v7 }
 0x416   : > { %4529 = vmatpush3.bf16.msra.mxu1 %v4818_v7 }
 0x418   : > { %4507 = vmatmul.mubr.msk.bf16.vlgmr.msra.gmra.mrb[8].mxu0 %vm822_vm14, %v4112_v32 }
 0x419   : > { %4511 = vmatpush3.bf16.msra.mxu0 %v4813_v5  ;;  %4514 = vmatprep.mubr.msk.bf16.mxu0 %vm822_vm14, %v4121_v47  ;;  %v1946_v5 = vrot.slane %v1944_v2, 4 }
 0x41a   : > { %4512 = vmatprep.subr.bf16.mxu0 %v4814_v40 }
 0x41b   : > { %v1948_v10 = vsel %vm5501_vm12, %v1946_v5, %v1947_v36  ;;  %v4819_v36 = vld [vmem:[%s5300_s19 + $0xb0] sm:$0xff]  }
 0x41c   : > { %v4134_v15 = vcombine.low %v1945_v11, %v1948_v10  ;;  %4534 = vmatprep.subr.bf16.mxu1 %v4819_v36  ;;  %v4150_v10 = vld [vmem:[%s5347_s21 + $0x1] ss:$0 sm:$0xff] }
 0x41d   : > { %4513 = vmatpush3.bf16.msra.mxu0 %v4814_v40 }
 0x41e   : > { %4518 = vmatprep.subr.bf16.mxu0 %v4815_v46 }
 0x424   : > { %4515 = vmatmul.mubr.msk.bf16.vlgmr.msra.gmra.mrb[8].mxu0 %vm822_vm14, %v4122_v1 }
 0x425   : > { %4519 = vmatpush3.bf16.msra.mxu0 %v4815_v46  ;;  %4522 = vmatprep.mubr.msk.bf16.mxu0 %vm822_vm14, %v4133_v41 }
 0x426   : > { %4520 = vmatprep.subr.bf16.mxu0 %v4816_v55 }
 0x429   : > { %4521 = vmatpush3.bf16.msra.mxu0 %v4816_v55 }
 0x430   : > { %4523 = vmatmul.mubr.msk.bf16.vlgmr.msra.gmra.mrb[8].mxu0 %vm822_vm14, %v4134_v15 }
 0x503   : > { %v4524_v16 = vpop.f32.mrb[8].mxu0 }
 0x504   : > { %v2041_v33 = vadd.f32 %v4524_v16, %v4140_v44  ;;  %v2012_v23 = vpop.f32.mrb[9].mxu0 }
 0x505   : > { %v2039_v37 = vadd.f32 %v4140_v44, %v2012_v23  ;;  %v4525_v24 = vpop.f32.mrb[10].mxu0 }
 0x506   : > { %v4143_v30 = vmul.f32 -1.442695, %v2041_v33  ;;  %v2042_v39 = vadd.f32 %v4525_v24, %v4140_v44  ;;  %v2015_v20 = vpop.f32.mrb[11].mxu0 }
 0x507   : > { %v4141_v25 = vmul.f32 -1.442695, %v2039_v37  ;;  %v2040_v26 = vadd.f32 %v4140_v44, %v2015_v20 }
 0x508   : > { %4873 = vpow2.f32 %v4143_v30  ;;  %v4144_v28 = vmul.f32 -1.442695, %v2042_v39 }
 0x509   : > { %4875 = vpow2.f32 %v4141_v25  ;;  %v4142_v29 = vmul.f32 -1.442695, %v2040_v26 }
 0x50a   : > { %4877 = vpow2.f32 %v4144_v28 }
 0x50b   : > { %4879 = vpow2.f32 %v4142_v29 }
 0x512   : > { %v4874_v4 = vpop.eup %4873 }
 0x513   : > { %v4876_v31 = vpop.eup %4875  ;;  %v2061_v40 = vadd.f32 1.0, %v4874_v4 }
 0x514   : > { %v2059_v32 = vadd.f32 1.0, %v4876_v31  ;;  %v4878_v47 = vpop.eup %4877 }
 0x515   : > { %v4880_v42 = vpop.eup %4879  ;;  %v2062_v56 = vadd.f32 1.0, %v4878_v47 }
 0x516   : > { %4881 = vrcp.f32 %v2059_v32  ;;  %v2060_v38 = vadd.f32 1.0, %v4880_v42 }
 0x517   : > { %4883 = vrcp.f32 %v2061_v40 }
 0x518   : > { %4885 = vrcp.f32 %v2060_v38 }
 0x519   : > { %4887 = vrcp.f32 %v2062_v56 }
 0x51a   : > { %4889 = vtanh.f32 %v2039_v37 }
 0x51b   : > { %4891 = vtanh.f32 %v2040_v26 }
 0x51c   : > { %4893 = vtanh.f32 %v2041_v33 }
 0x51d   : > { %4895 = vtanh.f32 %v2042_v39 }
 0x520   : > { %v4882_v45 = vpop.eup %4881 }
 0x521   : > { %2075 = vrot.lane.b32.xlu0 %v4882_v45, %s5087_s15  ;;  %v4884_v46 = vpop.eup %4883 }
 0x522   : > { %v4886_v0 = vpop.eup %4885 }
 0x523   : > { %2077 = vrot.lane.b32.xlu1 %v4886_v0, %s5087_s15  ;;  %v4888_v49 = vpop.eup %4887 }
 0x524   : > { %v4890_v52 = vpop.eup %4889 }
 0x525   : > { %2079 = vrot.lane.b32.xlu0 %v4884_v46, %s5087_s15  ;;  %v4892_v57 = vpop.eup %4891 }
 0x526   : > { %v4894_v63 = vpop.eup %4893 }
 0x527   : > { %2081 = vrot.lane.b32.xlu1 %v4888_v49, %s5087_s15  ;;  %v4896_v54 = vpop.eup %4895 }
 0x593   : > { %v2076_v50 = vpop.permute.xlu0 %2075 }
 0x594   : > { %v2087_v60 = vmul.f32 %v4890_v52, %v2076_v50 }
 0x595   : > { %v2078_v58 = vpop.permute.xlu1 %2077 }
 0x596   : > { %v2088_v48 = vmul.f32 %v4892_v57, %v2078_v58 }
 0x597   : > { %v2080_v61 = vpop.permute.xlu0 %2079 }
 0x598   : > { %v2091_v1 = vpack.c.bf16 %v2088_v48, %v2087_v60  ;;  %v2089_v41 = vmul.f32 %v4894_v63, %v2080_v61 }
 0x599   : > { %v2082_v55 = vpop.permute.xlu1 %2081 }
 0x59a   : > { %v2090_v2 = vmul.f32 %v4896_v54, %v2082_v55  ;;  %4530 = vmatprep.mubr.msk.bf16.mxu1 %vm822_vm14, %v2091_v1 }
 0x59c   : > { %v2092_v5 = vpack.c.bf16 %v2090_v2, %v2089_v41 }
 0x59e   : > { %4531 = vmatmul.mubr.msk.bf16.vlgmr.msra.gmra.mrb[4].mxu1 %vm822_vm14, %v2092_v5 }
 0x59f   : > { %4535 = vmatpush3.bf16.msra.mxu1 %v4819_v36 }
 0x5a0   : > { %4536 = vmatprep.subr.bf16.mxu1 %v4820_v53 }
 0x5a3   : > { %4537 = vmatpush3.bf16.msra.mxu1 %v4820_v53 }
 0x5a4   : > { %4542 = vmatprep.subr.bf16.mxu1 %v5682_v9 }
 0x671   : > { %v4532_v11 = vpop.f32.mrb[4].mxu1 }
 0x672   : > { %v5686_v15 = vadd.f32 %v4532_v11, %v4150_v10  ;;  %v2158_v44 = vpop.f32.mrb[5].mxu1 }
 0x673   : > { %v5688_v16 = vadd.f32 %v4150_v10, %v2158_v44  ;;  %v4533_v33 = vpop.f32.mrb[6].mxu1 }
 0x674   : > { %v2175_v23 = vadd.f32 %v5686_v15, %v5551_v13  ;;  %v5692_v37 = vadd.f32 %v4533_v33, %v4150_v10  ;;  %v2161_v24 = vpop.f32.mrb[7].mxu1 }
 0x675   : > { %v2173_v30 = vadd.f32 %v5688_v16, %v5556_v14  ;;  %v5696_v39 = vadd.f32 %v4150_v10, %v2161_v24 }
 0x676   : > { %v5699_v20 = vmul.f32 %v2175_v23, %v5380_v27  ;;  %v2176_v25 = vadd.f32 %v5692_v37, %v5563_v18 }
 0x677   : > { %v5704_v26 = vmul.f32 %v2173_v30, %v5371_v21  ;;  %v2174_v13 = vadd.f32 %v5696_v39, %v5568_v19 }
 0x678   : > { %v4323_v28 = vpack.c.bf16 %v5699_v20, %v5699_v20  ;;  %v5711_v29 = vmul.f32 %v2176_v25, %v5388_v34 }
 0x679   : > { %v4321_v14 = vpack.c.bf16 %v5704_v26, %v5704_v26  ;;  %v5716_v4 = vmul.f32 %v2174_v13, %v5373_v22 }
 0x67a   : > { %v2202_v31 = vrot.slane %v4323_v28, 7  ;;  %v4324_v18 = vpack.c.bf16 %v5711_v29, %v5711_v29 }
 0x67b   : > { %v2197_v32 = vrot.slane %v4321_v14, 7  ;;  %v4322_v19 = vpack.c.bf16 %v5716_v4, %v5716_v4 }
 0x67c   : > { %v2203_v35 = vrot.slane %v2202_v31, 4  ;;  %2216 = vst.msk [vmem:[#allocation3 + $0xc] sm:$0xe] %vm729_vm7, %v2202_v31  ;;  %v2204_v40 = vrot.slane %v4324_v18, 7 }
 0x67d   : > { %v2198_v47 = vrot.slane %v2197_v32, 4  ;;  %2213 = vst.msk [vmem:[#allocation3] sm:$0xe] %vm729_vm7, %v2197_v32  ;;  %v2199_v42 = vrot.slane %v4322_v19, 7 }
 0x67e   : > { %v2205_v38 = vsel %vm5402_vm8, %v2203_v35, %v2204_v40  ;;  %v2206_v56 = vrot.slane %v2204_v40, 4 }
 0x67f   : > { %2217 = vst.msk [vmem:[#allocation3 + $0x10] sm:$0xf] %vm731_vm9, %v2205_v38  ;;  %v2200_v7 = vsel %vm5402_vm8, %v2198_v47, %v2199_v42  ;;  %v2201_v45 = vrot.slane %v2199_v42, 4 }
 0x680   : > { %2218 = vst.msk [vmem:[#allocation3 + $0x14] sm:$0x1] %vm733_vm10, %v2206_v56 }
 0x681   : > { %2214 = vst.msk [vmem:[#allocation3 + $0x4] sm:$0xf] %vm731_vm9, %v2200_v7  ;;  %v4823_v7 = vld [vmem:[%s5300_s19 + $0xa8] sm:$0xff]  }
 0x682   : > { %2215 = vst.msk [vmem:[#allocation3 + $0x8] sm:$0x1] %vm733_vm10, %v2201_v45 }
 0x683   : > { %v5732_v46 = vld [vmem:[#allocation3 + $0xc] sm:$0xf] }
 0x684   : > { %v2219_v0 = vld [vmem:[#allocation3] sm:$0xf]  ;;  %v2255_v49 = vshrl.u32 %v5732_v46, 16  ;;  %v2258_v50 = vshll.u32 %v5732_v46, 16 }
 0x685   : > { %v2231_v52 = vshrl.u32 %v2219_v0, 16  ;;  %v2234_v57 = vshll.u32 %v2219_v0, 16 }
 0x686   : > { %v5736_v58 = vld [vmem:[#allocation3 + $0x10] sm:$0xf]  ;;  %v2257_v60 = vrot.slane %v2255_v49, 4  ;;  %v2260_v48 = vrot.slane %v2258_v50, 5  ;;  %v4824_v50 = vld [vmem:[%s5300_s19 + $0xc0] sm:$0xff]  }
 0x687   : > { %v2233_v63 = vrot.slane %v2231_v52, 4  ;;  %v2236_v1 = vrot.slane %v2234_v57, 5  ;;  %v5740_v54 = vld [vmem:[#allocation3 + $0x14] sm:$0x1]  ;;  %v2264_v5 = vshll.u32 %v5736_v58, 16  ;;  %v2268_v10 = vshrl.u32 %v5736_v58, 16 }
 0x688   : > { %v5738_v61 = vld [vmem:[#allocation3 + $0x4] sm:$0xf]  ;;  %v2261_v53 = vor.u32 %v2260_v48, %v2257_v60  ;;  %v2274_v30 = vshll.u32 %v5740_v54, 16  ;;  %v2433_v52 = vld [vmem:[#allocation3] sm:$0xe] }
 0x689   : > { %v2228_v55 = vld [vmem:[#allocation3 + $0x8] sm:$0x1]  ;;  %v2240_v41 = vshll.u32 %v5738_v61, 16  ;;  %v2244_v2 = vshrl.u32 %v5738_v61, 16  ;;  %v2237_v36 = vor.u32 %v2236_v1, %v2233_v63  ;;  %v2266_v23 = vrot.slane %v2264_v5, 5 }
 0x68a   : > { %v2250_v33 = vshll.u32 %v2228_v55, 16  ;;  %v2270_v24 = vrot.slane %v2268_v10, 4  ;;  %v2262_v28 = vrot.slane %v2261_v53, 4  ;;  %v2276_v19 = vrot.slane %v2274_v30, 5  ;;  %v5767_v48 = vld [vmem:[#allocation3 + $0x8] sm:$0x3] }
 0x68b   : > { %v2242_v11 = vrot.slane %v2240_v41, 5  ;;  %v2246_v44 = vrot.slane %v2244_v2, 4  ;;  %v2238_v25 = vrot.slane %v2237_v36, 4  ;;  %v4173_v45 = vcombine.low %v2219_v0, %v5738_v61 }
 0x68c   : > { %v2271_v14 = vor.u32 %v2270_v24, %v2266_v23  ;;  %v2252_v18 = vrot.slane %v2250_v33, 5  ;;  %v2267_v42 = vsel %vm5438_vm13, %v2262_v28, %v2266_v23  ;;  %v2441_v49 = vrot.slane %v5738_v61, 5  ;;  %v4826_v23 = vld [vmem:[%s5300_s19 + $0xc8] sm:$0xff]  }
 0x68d   : > { %v2247_v13 = vor.u32 %v2246_v44, %v2242_v11  ;;  %v2243_v35 = vsel %vm5438_vm13, %v2238_v25, %v2242_v11  ;;  %v2444_v60 = vrot.slane %v2228_v55, 5  ;;  %v2538_v63 = vshrl.u32 %v2433_v52, 16 }
 0x68e   : > { %v2272_v32 = vrot.slane %v2271_v14, 4  ;;  %v2443_v57 = vrot.slane %v2441_v49, 4  ;;  %v2541_v0 = vshll.u32 %v2433_v52, 16  ;;  %v4179_v1 = vrot.slane %v2433_v52, 9  ;;  %v4827_v14 = vld [vmem:[%s5300_s19 + $0xd0] sm:$0xff]  }
 0x68f   : > { %v2248_v31 = vrot.slane %v2247_v13, 4  ;;  %v2546_v53 = vrot.slane %v2244_v2, 5  ;;  %v2552_v11 = vshrl.u32 %v5767_v48, 16  ;;  %v2555_v44 = vshll.u32 %v5767_v48, 16 }
 0x690   : > { %v2277_v38 = vsel %vm5438_vm13, %v2272_v32, %v2276_v19  ;;  %v2445_v36 = vsel %vm5460_vm1, %v2443_v57, %v2444_v60  ;;  %v4174_v55 = vcombine.low %v5732_v46, %v5736_v58  ;;  %v2442_v33 = vsel %vm5460_vm1, %v4179_v1, %v2441_v49  ;;  %v2434_v46 = vld [vmem:[#allocation3 + $0xc] sm:$0xe] }
 0x691   : > { %v2253_v40 = vsel %vm5438_vm13, %v2248_v31, %v2252_v18  ;;  %v4168_v56 = vcombine.low %v2267_v42, %v2277_v38  ;;  %v2448_v24 = vrot.slane %v5736_v58, 5  ;;  %v2540_v30 = vrot.slane %v2538_v63, 5 }
 0x692   : > { %v4167_v47 = vcombine.low %v2243_v35, %v2253_v40  ;;  %v2543_v25 = vrot.slane %v2541_v0, 6  ;;  %v4185_v13 = vcombine.low %v2442_v33, %v2445_v36  ;;  %v2554_v2 = vrot.slane %v2552_v11, 5  ;;  %v2536_v40 = vld [vmem:[#allocation3 + $0x14] sm:$0x3] }
 0x693   : > { %v2557_v28 = vrot.slane %v2555_v44, 6  ;;  %v2450_v31 = vrot.slane %v2448_v24, 4  ;;  %v2451_v18 = vrot.slane %v5740_v54, 5  ;;  %v2564_v42 = vshll.u32 %v2434_v46, 16  ;;  %v4828_v36 = vld [vmem:[%s5300_s19 + $0xd8] sm:$0xff]  }
 0x694   : > { %4538 = vmatprep.mubr.msk.bf16.mxu1 %vm822_vm14, %v4167_v47  ;;  %v2544_v32 = vor.u32 %v2543_v25, %v2540_v30  ;;  %v2561_v47 = vshrl.u32 %v2434_v46, 16  ;;  %v4180_v38 = vrot.slane %v2434_v46, 9  ;;  %v2570_v54 = vrot.slane %v2264_v5, 6 }
 0x695   : > { %4539 = vmatmul.mubr.msk.bf16.vlgmr.msra.gmra.mrb[8].mxu1 %vm822_vm14, %v4168_v56  ;;  %v2558_v35 = vor.u32 %v2557_v28, %v2554_v2  ;;  %v2452_v56 = vsel %vm5460_vm1, %v2450_v31, %v2451_v18  ;;  %v2575_v49 = vshrl.u32 %v2536_v40, 16  ;;  %v2566_v63 = vrot.slane %v2564_v42, 6  ;;  %v4830_v31 = vld [vmem:[%s5300_s19 + $0xe8] sm:$0xff]  }
 0x696   : > { %4543 = vmatpush3.bf16.msra.mxu1 %v5682_v9  ;;  %4546 = vmatprep.mubr.msk.bf16.mxu1 %vm822_vm14, %v4173_v45  ;;  %v2547_v9 = vrot.slane %v2240_v41, 6  ;;  %v2569_v45 = vrot.slane %v2268_v10, 5  ;;  %v2449_v57 = vsel %vm5460_vm1, %v4180_v38, %v2448_v24  ;;  %v2563_v60 = vrot.slane %v2561_v47, 5 }
 0x697   : > { %4544 = vmatprep.subr.bf16.mxu1 %v4823_v7  ;;  %v4186_v0 = vcombine.low %v2449_v57, %v2452_v56  ;;  %v2673_v11 = vrot.slane %v5738_v61, 6  ;;  %v2676_v30 = vrot.slane %v5767_v48, 6  ;;  %v2680_v18 = vrot.slane %v5736_v58, 6  ;;  %v4214_v58 = vld [vmem:[%s5342_s12 + $0x2] ss:$0 sm:$0xff] }
 0x698   : > { %v2548_v41 = vor.u32 %v2547_v9, %v2546_v53  ;;  %v2571_v53 = vor.u32 %v2570_v54, %v2569_v45  ;;  %v2577_v9 = vrot.slane %v2575_v49, 5  ;;  %v2567_v44 = vor.u32 %v2566_v63, %v2563_v60 }
 0x699   : > { %v2675_v24 = vrot.slane %v2673_v11, 4 }
 0x69a   : > { %4545 = vmatpush3.bf16.msra.mxu1 %v4823_v7  ;;  %v2550_v19 = vrot.slane %v2548_v41, 4  ;;  %v2545_v7 = vrot.slane %v2544_v32, 4  ;;  %v2573_v33 = vrot.slane %v2571_v53, 4  ;;  %v2568_v25 = vrot.slane %v2567_v44, 4 }
 0x69b   : > { %4550 = vmatprep.subr.bf16.mxu1 %v4824_v50  ;;  %v2677_v2 = vsel %vm5501_vm12, %v2675_v24, %v2676_v30  ;;  %v2682_v32 = vrot.slane %v2680_v18, 4 }
 0x69c   : > { %v2559_v52 = vsel %vm5482_vm6, %v2550_v19, %v2558_v35  ;;  %v2549_v1 = vsel %vm5482_vm6, %v2545_v7, %v2548_v41  ;;  %v2572_v28 = vsel %vm5482_vm6, %v2568_v25, %v2571_v53  ;;  %v2683_v19 = vrot.slane %v2536_v40, 6  ;;  %v2666_v35 = vld [vmem:[#allocation3 + $0xc] sm:$0xc] }
 0x69d   : > { %v4195_v10 = vcombine.low %v2549_v1, %v2559_v52  ;;  %v4202_v47 = vrot.slane %v2666_v35, 10 }
 0x69e   : > { %v2684_v42 = vsel %vm5501_vm12, %v2682_v32, %v2683_v19 }
 0x69f   : > { %v2681_v38 = vsel %vm5501_vm12, %v4202_v47, %v2680_v18 }
 0x6a0   : > { %v4208_v56 = vcombine.low %v2681_v38, %v2684_v42  ;;  %v4833_v38 = vld [vmem:[%s5300_s19 + $0x100] sm:$0xff]  }
 0x6a1   : > { %4547 = vmatmul.mubr.msk.bf16.vlgmr.msra.gmra.mrb[8].mxu1 %vm822_vm14, %v4174_v55  ;;  %v4829_v55 = vld [vmem:[%s5300_s19 + $0xe0] sm:$0xff]  }
 0x6a2   : > { %4551 = vmatpush3.bf16.msra.mxu1 %v4824_v50  ;;  %4554 = vmatprep.mubr.msk.bf16.mxu1 %vm822_vm14, %v4185_v13  ;;  %v2578_v50 = vshll.u32 %v2536_v40, 16  ;;  %v2665_v13 = vld [vmem:[#allocation3] sm:$0xc] }
 0x6a3   : > { %4552 = vmatprep.subr.bf16.mxu1 %v4826_v23  ;;  %v4201_v61 = vrot.slane %v2665_v13, 10 }
 0x6a4   : > { %v2580_v5 = vrot.slane %v2578_v50, 6 }
 0x6a5   : > { %v2674_v46 = vsel %vm5501_vm12, %v4201_v61, %v2673_v11 }
 0x6a6   : > { %4553 = vmatpush3.bf16.msra.mxu1 %v4826_v23  ;;  %v2581_v23 = vor.u32 %v2580_v5, %v2577_v9  ;;  %v4207_v48 = vcombine.low %v2674_v46, %v2677_v2  ;;  %v4831_v9 = vld [vmem:[%s5306_s25 + $0x20] sm:$0xff]  }
 0x6a7   : > { %4558 = vmatprep.subr.bf16.mxu1 %v4827_v14  ;;  %4574 = vmatprep.subr.bf16.mxu0 %v4831_v9 }
 0x6a8   : > { %v2582_v41 = vsel %vm5482_vm6, %v2573_v33, %v2581_v23  ;;  %4575 = vmatpush3.bf16.msra.mxu0 %v4831_v9  ;;  %v4832_v23 = vld [vmem:[%s5306_s25 + $0x28] sm:$0xff]  }
 0x6a9   : > { %4576 = vmatprep.subr.bf16.mxu0 %v4832_v23 }
 0x6ac   : > { %4577 = vmatpush3.bf16.msra.mxu0 %v4832_v23 }
 0x6ad   : > { %4555 = vmatmul.mubr.msk.bf16.vlgmr.msra.gmra.mrb[8].mxu1 %vm822_vm14, %v4186_v0  ;;  %4582 = vmatprep.subr.bf16.mxu0 %v4833_v38 }
 0x6ae   : > { %4559 = vmatpush3.bf16.msra.mxu1 %v4827_v14  ;;  %4562 = vmatprep.mubr.msk.bf16.mxu1 %vm822_vm14, %v4195_v10  ;;  %v4196_v14 = vcombine.low %v2572_v28, %v2582_v41 }
 0x6af   : > { %4560 = vmatprep.subr.bf16.mxu1 %v4828_v36 }
 0x6b2   : > { %4561 = vmatpush3.bf16.msra.mxu1 %v4828_v36 }
 0x6b3   : > { %4566 = vmatprep.subr.bf16.mxu1 %v4829_v55 }
 0x6b9   : > { %4563 = vmatmul.mubr.msk.bf16.vlgmr.msra.gmra.mrb[8].mxu1 %vm822_vm14, %v4196_v14 }
 0x6ba   : > { %4567 = vmatpush3.bf16.msra.mxu1 %v4829_v55  ;;  %4570 = vmatprep.mubr.msk.bf16.mxu1 %vm822_vm14, %v4207_v48 }
 0x6bb   : > { %4568 = vmatprep.subr.bf16.mxu1 %v4830_v31 }
 0x6be   : > { %4569 = vmatpush3.bf16.msra.mxu1 %v4830_v31 }
 0x6c5   : > { %4571 = vmatmul.mubr.msk.bf16.vlgmr.msra.gmra.mrb[8].mxu1 %vm822_vm14, %v4208_v56  ;;  %v4834_v56 = vld [vmem:[%s5300_s19 + $0x108] sm:$0xff]  }
 0x798   : > { %v4572_v7 = vpop.f32.mrb[8].mxu1 }
 0x799   : > { %v2777_v45 = vadd.f32 %v4572_v7, %v4214_v58  ;;  %v2748_v54 = vpop.f32.mrb[9].mxu1  ;;  %v4224_v7 = vld [vmem:[%s5347_s21 + $0x2] ss:$0 sm:$0xff] }
 0x79a   : > { %v2775_v49 = vadd.f32 %v4214_v58, %v2748_v54  ;;  %v4573_v50 = vpop.f32.mrb[10].mxu1  ;;  %v2183_v54 = vadd.f32 %v5686_v15, %v5538_v3 }
 0x79b   : > { %v4217_v40 = vmul.f32 -1.442695, %v2777_v45  ;;  %v2778_v52 = vadd.f32 %v4573_v50, %v4214_v58  ;;  %v2751_v57 = vpop.f32.mrb[11].mxu1 }
 0x79c   : > { %v4215_v60 = vmul.f32 -1.442695, %v2775_v49  ;;  %v2776_v63 = vadd.f32 %v4214_v58, %v2751_v57  ;;  %v5830_v58 = vld [vmem:[%s5300_s19 + $0xf0] sm:$0xff]  }
 0x79d   : > { %4897 = vpow2.f32 %v4217_v40  ;;  %v4218_v0 = vmul.f32 -1.442695, %v2778_v52  ;;  %v2181_v40 = vadd.f32 %v5688_v16, %v5540_v8 }
 0x79e   : > { %4899 = vpow2.f32 %v4215_v60  ;;  %v4216_v1 = vmul.f32 -1.442695, %v2776_v63  ;;  %v2184_v60 = vadd.f32 %v5692_v37, %v5544_v59 }
 0x79f   : > { %4901 = vpow2.f32 %v4218_v0 }
 0x7a0   : > { %4903 = vpow2.f32 %v4216_v1 }
 0x7a7   : > { %v4898_v36 = vpop.eup %4897 }
 0x7a8   : > { %v4900_v10 = vpop.eup %4899  ;;  %v2797_v5 = vadd.f32 1.0, %v4898_v36 }
 0x7a9   : > { %v2795_v53 = vadd.f32 1.0, %v4900_v10  ;;  %v4902_v11 = vpop.eup %4901  ;;  %v2182_v10 = vadd.f32 %v5696_v39, %v5548_v12 }
 0x7aa   : > { %v4904_v44 = vpop.eup %4903  ;;  %v2798_v33 = vadd.f32 1.0, %v4902_v11 }
 0x7ab   : > { %4905 = vrcp.f32 %v2795_v53  ;;  %v2796_v55 = vadd.f32 1.0, %v4904_v44 }
 0x7ac   : > { %4907 = vrcp.f32 %v2797_v5 }
 0x7ad   : > { %4909 = vrcp.f32 %v2796_v55 }
 0x7ae   : > { %4911 = vrcp.f32 %v2798_v33 }
 0x7af   : > { %4913 = vtanh.f32 %v2775_v49 }
 0x7b0   : > { %4915 = vtanh.f32 %v2776_v63 }
 0x7b1   : > { %4917 = vtanh.f32 %v2777_v45 }
 0x7b2   : > { %4919 = vtanh.f32 %v2778_v52 }
 0x7b5   : > { %v4906_v24 = vpop.eup %4905 }
 0x7b6   : > { %2811 = vrot.lane.b32.xlu0 %v4906_v24, %s5087_s15  ;;  %v4908_v30 = vpop.eup %4907 }
 0x7b7   : > { %v4910_v25 = vpop.eup %4909 }
 0x7b8   : > { %2813 = vrot.lane.b32.xlu1 %v4910_v25, %s5087_s15  ;;  %v4912_v13 = vpop.eup %4911 }
 0x7b9   : > { %v4914_v61 = vpop.eup %4913 }
 0x7ba   : > { %2815 = vrot.lane.b32.xlu0 %v4908_v30, %s5087_s15  ;;  %v4916_v2 = vpop.eup %4915 }
 0x7bb   : > { %v4918_v48 = vpop.eup %4917 }
 0x7bc   : > { %2817 = vrot.lane.b32.xlu1 %v4912_v13, %s5087_s15  ;;  %v4920_v32 = vpop.eup %4919 }
 0x828   : > { %v2812_v41 = vpop.permute.xlu0 %2811 }
 0x829   : > { %v2823_v14 = vmul.f32 %v4914_v61, %v2812_v41 }
 0x82a   : > { %v2814_v28 = vpop.permute.xlu1 %2813 }
 0x82b   : > { %v2824_v46 = vmul.f32 %v4916_v2, %v2814_v28 }
 0x82c   : > { %v2816_v31 = vpop.permute.xlu0 %2815 }
 0x82d   : > { %v2827_v18 = vpack.c.bf16 %v2824_v46, %v2823_v14  ;;  %v2825_v35 = vmul.f32 %v4918_v48, %v2816_v31 }
 0x82e   : > { %v2818_v19 = vpop.permute.xlu1 %2817 }
 0x82f   : > { %v2826_v47 = vmul.f32 %v4920_v32, %v2818_v19  ;;  %4578 = vmatprep.mubr.msk.bf16.mxu0 %vm822_vm14, %v2827_v18 }
 0x831   : > { %v2828_v42 = vpack.c.bf16 %v2826_v47, %v2825_v35 }
 0x833   : > { %4579 = vmatmul.mubr.msk.bf16.vlgmr.msra.gmra.mrb[12].mxu0 %vm822_vm14, %v2828_v42 }
 0x834   : > { %4583 = vmatpush3.bf16.msra.mxu0 %v4833_v38 }
 0x835   : > { %4584 = vmatprep.subr.bf16.mxu0 %v4834_v56 }
 0x838   : > { %4585 = vmatpush3.bf16.msra.mxu0 %v4834_v56 }
 0x839   : > { %4590 = vmatprep.subr.bf16.mxu0 %v5830_v58 }
 0x906   : > { %v4580_v45 = vpop.f32.mrb[12].mxu0 }
 0x907   : > { %v2903_v49 = vadd.f32 %v4580_v45, %v4224_v7  ;;  %v2894_v50 = vpop.f32.mrb[13].mxu0 }
 0x908   : > { %v2895_v52 = vadd.f32 %v4224_v7, %v2894_v50  ;;  %v4581_v57 = vpop.f32.mrb[14].mxu0 }
 0x909   : > { %v2911_v63 = vadd.f32 %v2903_v49, %v5699_v20  ;;  %v5841_v0 = vadd.f32 %v2903_v49, %v2183_v54  ;;  %v2906_v1 = vadd.f32 %v4581_v57, %v4224_v7  ;;  %v2897_v36 = vpop.f32.mrb[15].mxu0 }
 0x90a   : > { %v2909_v3 = vadd.f32 %v2895_v52, %v5704_v26  ;;  %v5846_v15 = vadd.f32 %v2895_v52, %v2181_v40  ;;  %v2898_v53 = vadd.f32 %v4224_v7, %v2897_v36 }
 0x90b   : > { %v2915_v8 = vmul.f32 %v2911_v63, %v5380_v27  ;;  %v2912_v16 = vadd.f32 %v2906_v1, %v5711_v29  ;;  %v5850_v9 = vadd.f32 %v2906_v1, %v2184_v60 }
 0x90c   : > { %v2913_v59 = vmul.f32 %v2909_v3, %v5371_v21  ;;  %v2910_v37 = vadd.f32 %v2898_v53, %v5716_v4  ;;  %v5854_v20 = vadd.f32 %v2898_v53, %v2182_v10 }
 0x90d   : > { %v4327_v5 = vpack.c.bf16 %v2915_v8, %v2915_v8  ;;  %v2916_v12 = vmul.f32 %v2912_v16, %v5388_v34 }
 0x90e   : > { %v4325_v39 = vpack.c.bf16 %v2913_v59, %v2913_v59  ;;  %v2914_v26 = vmul.f32 %v2910_v37, %v5373_v22 }
 0x90f   : > { %v2938_v11 = vrot.slane %v4327_v5, 7  ;;  %v4328_v44 = vpack.c.bf16 %v2916_v12, %v2916_v12 }
 0x910   : > { %v2933_v55 = vrot.slane %v4325_v39, 7  ;;  %v4326_v33 = vpack.c.bf16 %v2914_v26, %v2914_v26 }
 0x911   : > { %v2939_v23 = vrot.slane %v2938_v11, 4  ;;  %2952 = vst.msk [vmem:[#allocation3 + $0xc] sm:$0xe] %vm729_vm7, %v2938_v11  ;;  %v2940_v29 = vrot.slane %v4328_v44, 7  ;;  %v4837_v44 = vld [vmem:[%s5300_s19 + $0xf8] sm:$0xff]  }
 0x912   : > { %v2934_v24 = vrot.slane %v2933_v55, 4  ;;  %2949 = vst.msk [vmem:[#allocation3] sm:$0xe] %vm729_vm7, %v2933_v55  ;;  %v2935_v4 = vrot.slane %v4326_v33, 7 }
 0x913   : > { %v2941_v30 = vsel %vm5402_vm8, %v2939_v23, %v2940_v29  ;;  %v2942_v25 = vrot.slane %v2940_v29, 4  ;;  %v4838_v23 = vld [vmem:[%s5300_s19 + $0x110] sm:$0xff]  }
 0x914   : > { %2953 = vst.msk [vmem:[#allocation3 + $0x10] sm:$0xf] %vm731_vm9, %v2941_v30  ;;  %v2936_v13 = vsel %vm5402_vm8, %v2934_v24, %v2935_v4  ;;  %v2937_v41 = vrot.slane %v2935_v4, 4 }
 0x915   : > { %2954 = vst.msk [vmem:[#allocation3 + $0x14] sm:$0x1] %vm733_vm10, %v2942_v25 }
 0x916   : > { %2950 = vst.msk [vmem:[#allocation3 + $0x4] sm:$0xf] %vm731_vm9, %v2936_v13 }
 0x917   : > { %2951 = vst.msk [vmem:[#allocation3 + $0x8] sm:$0x1] %vm733_vm10, %v2937_v41 }
 0x918   : > { %v5868_v61 = vld [vmem:[#allocation3 + $0xc] sm:$0xf] }
 0x919   : > { %v2955_v2 = vld [vmem:[#allocation3] sm:$0xf]  ;;  %v2991_v28 = vshrl.u32 %v5868_v61, 16  ;;  %v2994_v14 = vshll.u32 %v5868_v61, 16 }
 0x91a   : > { %v2967_v46 = vshrl.u32 %v2955_v2, 16  ;;  %v2970_v31 = vshll.u32 %v2955_v2, 16  ;;  %v3169_v29 = vld [vmem:[#allocation3] sm:$0xe] }
 0x91b   : > { %v5872_v48 = vld [vmem:[#allocation3 + $0x10] sm:$0xf]  ;;  %v2993_v43 = vrot.slane %v2991_v28, 4  ;;  %v2996_v18 = vrot.slane %v2994_v14, 5  ;;  %v3274_v30 = vshrl.u32 %v3169_v29, 16  ;;  %v3277_v25 = vshll.u32 %v3169_v29, 16 }
 0x91c   : > { %v2969_v19 = vrot.slane %v2967_v46, 4  ;;  %v2972_v35 = vrot.slane %v2970_v31, 5  ;;  %v5876_v47 = vld [vmem:[#allocation3 + $0x14] sm:$0x1]  ;;  %v3000_v7 = vshll.u32 %v5872_v48, 16  ;;  %v3004_v49 = vshrl.u32 %v5872_v48, 16 }
 0x91d   : > { %v5874_v32 = vld [vmem:[#allocation3 + $0x4] sm:$0xf]  ;;  %v2997_v54 = vor.u32 %v2996_v18, %v2993_v43  ;;  %v3010_v63 = vshll.u32 %v5876_v47, 16  ;;  %v4253_v13 = vrot.slane %v3169_v29, 9  ;;  %v4248_v46 = vcombine.low %v5868_v61, %v5872_v48  ;;  %v4840_v43 = vld [vmem:[%s5300_s19 + $0x118] sm:$0xff]   ;;  %v4843_v29 = vld [vmem:[%s5300_s19 + $0x130] sm:$0xff]  }
 0x91e   : > { %v2964_v42 = vld [vmem:[#allocation3 + $0x8] sm:$0x1]  ;;  %v2976_v38 = vshll.u32 %v5874_v32, 16  ;;  %v2980_v56 = vshrl.u32 %v5874_v32, 16  ;;  %v2973_v45 = vor.u32 %v2972_v35, %v2969_v19  ;;  %v3002_v57 = vrot.slane %v3000_v7, 5 }
 0x91f   : > { %v2986_v52 = vshll.u32 %v2964_v42, 16  ;;  %v3006_v60 = vrot.slane %v3004_v49, 4  ;;  %v2998_v10 = vrot.slane %v2997_v54, 4  ;;  %v3012_v59 = vrot.slane %v3010_v63, 5  ;;  %v5903_v4 = vld [vmem:[#allocation3 + $0x8] sm:$0x3] }
 0x920   : > { %v2978_v50 = vrot.slane %v2976_v38, 5  ;;  %v2982_v40 = vrot.slane %v2980_v56, 4  ;;  %v2974_v1 = vrot.slane %v2973_v45, 4  ;;  %v4247_v55 = vcombine.low %v2955_v2, %v5874_v32  ;;  %v4841_v54 = vld [vmem:[%s5300_s19 + $0x120] sm:$0xff]   ;;  %v3170_v61 = vld [vmem:[#allocation3 + $0xc] sm:$0xe] }
 0x921   : > { %v3007_v3 = vor.u32 %v3006_v60, %v3002_v57  ;;  %v2988_v8 = vrot.slane %v2986_v52, 5  ;;  %v3003_v39 = vsel %vm5438_vm13, %v2998_v10, %v3002_v57  ;;  %v3177_v33 = vrot.slane %v5874_v32, 5  ;;  %v3272_v63 = vld [vmem:[#allocation3 + $0x14] sm:$0x3] }
 0x922   : > { %v2983_v36 = vor.u32 %v2982_v40, %v2978_v50  ;;  %v2979_v37 = vsel %vm5438_vm13, %v2974_v1, %v2978_v50  ;;  %v3180_v24 = vrot.slane %v2964_v42, 5  ;;  %v3282_v2 = vrot.slane %v2980_v56, 5 }
 0x923   : > { %v3008_v16 = vrot.slane %v3007_v3, 4  ;;  %v3179_v17 = vrot.slane %v3177_v33, 4  ;;  %v3288_v28 = vshrl.u32 %v5903_v4, 16  ;;  %v3291_v14 = vshll.u32 %v5903_v4, 16 }
 0x924   : > { %v2984_v53 = vrot.slane %v2983_v36, 4  ;;  %v3178_v31 = vsel %vm5460_vm1, %v4253_v13, %v3177_v33  ;;  %v3184_v18 = vrot.slane %v5872_v48, 5  ;;  %v3276_v19 = vrot.slane %v3274_v30, 5 }
 0x925   : > { %v3013_v26 = vsel %vm5438_vm13, %v3008_v16, %v3012_v59  ;;  %v3181_v41 = vsel %vm5460_vm1, %v3179_v17, %v3180_v24  ;;  %v3279_v35 = vrot.slane %v3277_v25, 6  ;;  %v3290_v56 = vrot.slane %v3288_v28, 5 }
 0x926   : > { %v2989_v5 = vsel %vm5438_vm13, %v2984_v53, %v2988_v8  ;;  %v4242_v11 = vcombine.low %v3003_v39, %v3013_v26  ;;  %v4259_v42 = vcombine.low %v3178_v31, %v3181_v41  ;;  %v3293_v45 = vrot.slane %v3291_v14, 6  ;;  %v3401_v41 = vld [vmem:[#allocation3] sm:$0xc]  ;;  %v4844_v31 = vld [vmem:[%s5300_s19 + $0x138] sm:$0xff]  }
 0x927   : > { %v4241_v12 = vcombine.low %v2979_v37, %v2989_v5  ;;  %v3186_v50 = vrot.slane %v3184_v18, 4  ;;  %v3187_v40 = vrot.slane %v5876_v47, 5  ;;  %v3280_v52 = vor.u32 %v3279_v35, %v3276_v19  ;;  %v3402_v35 = vld [vmem:[#allocation3 + $0xc] sm:$0xc] }
 0x928   : > { %v3294_v60 = vor.u32 %v3293_v45, %v3290_v56  ;;  %v3297_v1 = vshrl.u32 %v3170_v61, 16  ;;  %v3300_v36 = vshll.u32 %v3170_v61, 16  ;;  %v4254_v10 = vrot.slane %v3170_v61, 9 }
 0x929   : > { %4586 = vmatprep.mubr.msk.bf16.mxu0 %vm822_vm14, %v4241_v12  ;;  %v3188_v3 = vsel %vm5460_vm1, %v3186_v50, %v3187_v40  ;;  %v3281_v53 = vrot.slane %v3280_v52, 4  ;;  %v3305_v8 = vrot.slane %v3004_v49, 5  ;;  %v3306_v47 = vrot.slane %v3000_v7, 6 }
 0x92a   : > { %4587 = vmatmul.mubr.msk.bf16.vlgmr.msra.gmra.mrb[16].mxu0 %vm822_vm14, %v4242_v11  ;;  %v3311_v16 = vshrl.u32 %v3272_v63, 16  ;;  %v3314_v59 = vshll.u32 %v3272_v63, 16  ;;  %v3185_v5 = vsel %vm5460_vm1, %v4254_v10, %v3184_v18  ;;  %v3299_v12 = vrot.slane %v3297_v1, 5 }
 0x92b   : > { %4591 = vmatpush3.bf16.msra.mxu0 %v5830_v58  ;;  %4594 = vmatprep.mubr.msk.bf16.mxu0 %vm822_vm14, %v4247_v55  ;;  %v3283_v58 = vrot.slane %v2976_v38, 6  ;;  %v3302_v39 = vrot.slane %v3300_v36, 6  ;;  %v4260_v26 = vcombine.low %v3185_v5, %v3188_v3  ;;  %v3307_v55 = vor.u32 %v3306_v47, %v3305_v8  ;;  %v4845_v8 = vld [vmem:[%s5306_s25 + $0x30] sm:$0xff]  }
 0x92c   : > { %4592 = vmatprep.subr.bf16.mxu0 %v4837_v44  ;;  %v3313_v33 = vrot.slane %v3311_v16, 5  ;;  %v3316_v7 = vrot.slane %v3314_v59, 6  ;;  %v3412_v25 = vrot.slane %v5903_v4, 6  ;;  %v3419_v19 = vrot.slane %v3272_v63, 6  ;;  %4622 = vmatprep.subr.bf16.mxu1 %v4845_v8 }
 0x92d   : > { %v3284_v38 = vor.u32 %v3283_v58, %v3282_v2  ;;  %v3303_v51 = vor.u32 %v3302_v39, %v3299_v12  ;;  %v3309_v17 = vrot.slane %v3307_v55, 4  ;;  %v4276_v6 = vrot.slane %v3402_v35, 10  ;;  %4623 = vmatpush3.bf16.msra.mxu1 %v4845_v8  ;;  %v4846_v12 = vld [vmem:[%s5306_s25 + $0x38] sm:$0xff]   ;;  %s5089_s25 = smov 4   ;;  %v4303_v8 = vld [vmem:[%s569_s18] ss:$0 sm:$0xff] }
 0x92e   : > { %v3317_v24 = vor.u32 %v3316_v7, %v3313_v33  ;;  %4624 = vmatprep.subr.bf16.mxu1 %v4846_v12 }
 0x92f   : > { %4593 = vmatpush3.bf16.msra.mxu0 %v4837_v44  ;;  %v3286_v57 = vrot.slane %v3284_v38, 4  ;;  %v3285_v11 = vsel %vm5482_vm6, %v3281_v53, %v3284_v38  ;;  %v4842_v44 = vld [vmem:[%s5300_s19 + $0x128] sm:$0xff]   ;;  %v3304_v13 = vrot.slane %v3303_v51, 4  ;;  %s5088_s19 = smov 124  }
 0x930   : > { %4598 = vmatprep.subr.bf16.mxu0 %v4838_v23  ;;  %v3318_v2 = vsel %vm5482_vm6, %v3309_v17, %v3317_v24 }
 0x931   : > { %v3295_v37 = vsel %vm5482_vm6, %v3286_v57, %v3294_v60  ;;  %v3308_v28 = vsel %vm5482_vm6, %v3304_v13, %v3307_v55  ;;  %4625 = vmatpush3.bf16.msra.mxu1 %v4846_v12 }
 0x932   : > { %v4269_v49 = vcombine.low %v3285_v11, %v3295_v37  ;;  %v4270_v14 = vcombine.low %v3308_v28, %v3318_v2  ;;  %v4298_v28 = vld [vmem:[%s5347_s21 + $0x3] ss:$0 sm:$0xff] }
 0x936   : > { %4595 = vmatmul.mubr.msk.bf16.vlgmr.msra.gmra.mrb[16].mxu0 %vm822_vm14, %v4248_v46 }
 0x937   : > { %4599 = vmatpush3.bf16.msra.mxu0 %v4838_v23  ;;  %4602 = vmatprep.mubr.msk.bf16.mxu0 %vm822_vm14, %v4259_v42  ;;  %v3409_v23 = vrot.slane %v5874_v32, 6  ;;  %v4275_v32 = vrot.slane %v3401_v41, 10 }
 0x938   : > { %4600 = vmatprep.subr.bf16.mxu0 %v4840_v43 }
 0x939   : > { %v3411_v30 = vrot.slane %v3409_v23, 4  ;;  %v3410_v46 = vsel %vm5501_vm12, %v4275_v32, %v3409_v23  ;;  %v4847_v32 = vld [vmem:[%s5357_s28] sm:$0xff]  }
 0x93a   : > { %4630 = vmatprep.subr.bf16.mxu1 %v4847_v32 }
 0x93b   : > { %4601 = vmatpush3.bf16.msra.mxu0 %v4840_v43  ;;  %v3413_v58 = vsel %vm5501_vm12, %v3411_v30, %v3412_v25  ;;  %v3416_v43 = vrot.slane %v5872_v48, 6  ;;  %v4288_v48 = vld [vmem:[%s5342_s12 + $0x3] ss:$0 sm:$0xff] }
 0x93c   : > { %4606 = vmatprep.subr.bf16.mxu0 %v4841_v54  ;;  %v4281_v4 = vcombine.low %v3410_v46, %v3413_v58  ;;  %v4848_v58 = vld [vmem:[%s5357_s28 + $0x8] sm:$0xff]  }
 0x93d   : > { %v3418_v18 = vrot.slane %v3416_v43, 4  ;;  %v3417_v38 = vsel %vm5501_vm12, %v4276_v6, %v3416_v43 }
 0x93f   : > { %v3420_v42 = vsel %vm5501_vm12, %v3418_v18, %v3419_v19 }
 0x940   : > { %v4282_v56 = vcombine.low %v3417_v38, %v3420_v42 }
 0x942   : > { %4603 = vmatmul.mubr.msk.bf16.vlgmr.msra.gmra.mrb[16].mxu0 %vm822_vm14, %v4260_v26 }
 0x943   : > { %4607 = vmatpush3.bf16.msra.mxu0 %v4841_v54  ;;  %4610 = vmatprep.mubr.msk.bf16.mxu0 %vm822_vm14, %v4269_v49 }
 0x944   : > { %4608 = vmatprep.subr.bf16.mxu0 %v4842_v44 }
 0x947   : > { %4609 = vmatpush3.bf16.msra.mxu0 %v4842_v44 }
 0x948   : > { %4614 = vmatprep.subr.bf16.mxu0 %v4843_v29 }
 0x94e   : > { %4611 = vmatmul.mubr.msk.bf16.vlgmr.msra.gmra.mrb[16].mxu0 %vm822_vm14, %v4270_v14 }
 0x94f   : > { %4615 = vmatpush3.bf16.msra.mxu0 %v4843_v29  ;;  %4618 = vmatprep.mubr.msk.bf16.mxu0 %vm822_vm14, %v4281_v4 }
 0x950   : > { %4616 = vmatprep.subr.bf16.mxu0 %v4844_v31 }
 0x953   : > { %4617 = vmatpush3.bf16.msra.mxu0 %v4844_v31 }
 0x95a   : > { %4619 = vmatmul.mubr.msk.bf16.vlgmr.msra.gmra.mrb[16].mxu0 %vm822_vm14, %v4282_v56 }
 0xa2d   : > { %v4620_v45 = vpop.f32.mrb[16].mxu0 }
 0xa2e   : > { %v3513_v54 = vadd.f32 %v4620_v45, %v4288_v48  ;;  %v3484_v61 = vpop.f32.mrb[17].mxu0 }
 0xa2f   : > { %v3511_v50 = vadd.f32 %v4288_v48, %v3484_v61  ;;  %v4621_v40 = vpop.f32.mrb[18].mxu0 }
 0xa30   : > { %v4291_v52 = vmul.f32 -1.442695, %v3513_v54  ;;  %v3514_v57 = vadd.f32 %v4621_v40, %v4288_v48  ;;  %v3487_v60 = vpop.f32.mrb[19].mxu0 }
 0xa31   : > { %v4289_v63 = vmul.f32 -1.442695, %v3511_v50  ;;  %v3512_v1 = vadd.f32 %v4288_v48, %v3487_v60  ;;  %v4948_v60 = vld [vmem:[#allocation2 + $0x10] sm:$0xff] }
 0xa32   : > { %4921 = vpow2.f32 %v4291_v52  ;;  %v4292_v36 = vmul.f32 -1.442695, %v3514_v57  ;;  %v4947_v52 = vld [vmem:[#allocation2 + $0x18] sm:$0xff] }
 0xa33   : > { %4923 = vpow2.f32 %v4289_v63  ;;  %v4290_v62 = vmul.f32 -1.442695, %v3512_v1  ;;  %v3745_v63 = vmul.f32 %v4948_v60, %v5380_v27 }
 0xa34   : > { %4925 = vpow2.f32 %v4292_v36 }
 0xa35   : > { %4927 = vpow2.f32 %v4290_v62 }
 0xa3c   : > { %v4922_v10 = vpop.eup %4921 }
 0xa3d   : > { %v4924_v3 = vpop.eup %4923  ;;  %v3533_v47 = vadd.f32 1.0, %v4922_v10 }
 0xa3e   : > { %v3531_v53 = vadd.f32 1.0, %v4924_v3  ;;  %v4926_v16 = vpop.eup %4925 }
 0xa3f   : > { %v4928_v59 = vpop.eup %4927  ;;  %v3534_v5 = vadd.f32 1.0, %v4926_v16 }
 0xa40   : > { %4929 = vrcp.f32 %v3531_v53  ;;  %v3532_v37 = vadd.f32 1.0, %v4928_v59 }
 0xa41   : > { %4931 = vrcp.f32 %v3533_v47 }
 0xa42   : > { %4933 = vrcp.f32 %v3532_v37 }
 0xa43   : > { %4935 = vrcp.f32 %v3534_v5 }
 0xa44   : > { %4937 = vtanh.f32 %v3511_v50 }
 0xa45   : > { %4939 = vtanh.f32 %v3512_v1 }
 0xa46   : > { %4941 = vtanh.f32 %v3513_v54 }
 0xa47   : > { %4943 = vtanh.f32 %v3514_v57  ;;  %v3746_v57 = vmul.f32 %v4947_v52, %v5388_v34 }
 0xa4a   : > { %v4930_v39 = vpop.eup %4929 }
 0xa4b   : > { %3547 = vrot.lane.b32.xlu0 %v4930_v39, %s5087_s15  ;;  %v4932_v26 = vpop.eup %4931 }
 0xa4c   : > { %v4934_v11 = vpop.eup %4933 }
 0xa4d   : > { %3549 = vrot.lane.b32.xlu1 %v4934_v11, %s5087_s15  ;;  %v4936_v44 = vpop.eup %4935 }
 0xa4e   : > { %v4938_v55 = vpop.eup %4937 }
 0xa4f   : > { %3551 = vrot.lane.b32.xlu0 %v4932_v26, %s5087_s15  ;;  %v4940_v33 = vpop.eup %4939 }
 0xa50   : > { %v4942_v17 = vpop.eup %4941 }
 0xa51   : > { %3553 = vrot.lane.b32.xlu1 %v4936_v44, %s5087_s15  ;;  %v4944_v30 = vpop.eup %4943 }
 0xabd   : > { %v3548_v49 = vpop.permute.xlu0 %3547 }
 0xabe   : > { %v3559_v23 = vmul.f32 %v4938_v55, %v3548_v49 }
 0xabf   : > { %v3550_v7 = vpop.permute.xlu1 %3549 }
 0xac0   : > { %v3560_v51 = vmul.f32 %v4940_v33, %v3550_v7 }
 0xac1   : > { %v3552_v29 = vpop.permute.xlu0 %3551 }
 0xac2   : > { %v3563_v24 = vpack.c.bf16 %v3560_v51, %v3559_v23  ;;  %v3561_v13 = vmul.f32 %v4942_v17, %v3552_v29 }
 0xac3   : > { %v3554_v25 = vpop.permute.xlu1 %3553 }
 0xac4   : > { %v3562_v41 = vmul.f32 %v4944_v30, %v3554_v25  ;;  %4626 = vmatprep.mubr.msk.bf16.mxu1 %vm822_vm14, %v3563_v24 }
 0xac6   : > { %v3564_v2 = vpack.c.bf16 %v3562_v41, %v3561_v13 }
 0xac8   : > { %4627 = vmatmul.mubr.msk.bf16.vlgmr.msra.gmra.mrb[12].mxu1 %vm822_vm14, %v3564_v2 }
 0xac9   : > { %4631 = vmatpush3.bf16.msra.mxu1 %v4847_v32 }
 0xaca   : > { %4632 = vmatprep.subr.bf16.mxu1 %v4848_v58 }
 0xacd   : > { %4633 = vmatpush3.bf16.msra.mxu1 %v4848_v58 }
 0xb9b   : > { %v4628_v14 = vpop.f32.mrb[12].mxu1 }
 0xb9c   : > { %v3639_v46 = vadd.f32 %v4628_v14, %v4298_v28  ;;  %v3630_v31 = vpop.f32.mrb[13].mxu1 }
 0xb9d   : > { %v3631_v4 = vadd.f32 %v4298_v28, %v3630_v31  ;;  %v4629_v43 = vpop.f32.mrb[14].mxu1 }
 0xb9e   : > { %v3647_v18 = vadd.f32 %v3639_v46, %v5841_v0  ;;  %v3642_v19 = vadd.f32 %v4629_v43, %v4298_v28  ;;  %v3633_v35 = vpop.f32.mrb[15].mxu1  ;;  %v4945_v0 = vld [vmem:[#allocation2 + $0x8] sm:$0xff] }
 0xb9f   : > { %v3645_v6 = vadd.f32 %v3631_v4, %v5846_v15  ;;  %v3634_v42 = vadd.f32 %v4298_v28, %v3633_v35  ;;  %v3744_v15 = vmul.f32 %v4945_v0, %v5373_v22 }
 0xba0   : > { %v3648_v38 = vadd.f32 %v3642_v19, %v5850_v9  ;;  %v3651_v48 = vmul.f32 %v3647_v18, %v5380_v27  ;;  %v4946_v9 = vld [vmem:[#allocation2] sm:$0xff] }
 0xba1   : > { %v3646_v56 = vadd.f32 %v3634_v42, %v5854_v20  ;;  %v3649_v54 = vmul.f32 %v3645_v6, %v5371_v21  ;;  %v3743_v20 = vmul.f32 %v4946_v9, %v5371_v21 }
 0xba2   : > { %v3652_v45 = vmul.f32 %v3648_v38, %v5388_v34 }
 0xba3   : > { %v3650_v61 = vmul.f32 %v3646_v56, %v5373_v22 }
 0xba4   : > { %v3654_v50 = vpack.c.bf16 %v3652_v45, %v3651_v48 }
 0xba5   : > { %v3653_v40 = vpack.c.bf16 %v3650_v61, %v3649_v54 }
 0xba6   : > { %3670 = vrot.lane.b32.xlu1 %v3654_v50, %s5087_s15 }
 0xba7   : > { %3668 = vrot.lane.b32.xlu0 %v3653_v40, %s5087_s15 }
 0xbaa   : > { %3753 = vrot.lane.b32.xlu1 %v3744_v15, %s5088_s19 }
 0xbab   : > { %3751 = vrot.lane.b32.xlu0 %v3743_v20, %s5088_s19 }
 0xbae   : > { %3757 = vrot.lane.b32.xlu1 %v3746_v57, %s5088_s19 }
 0xbaf   : > { %3755 = vrot.lane.b32.xlu0 %v3745_v63, %s5088_s19 }
 0xbb2   : > { %3773 = vrot.lane.b32.xlu1 %v4945_v0, %s5089_s25 }
 0xbb3   : > { %3771 = vrot.lane.b32.xlu0 %v4946_v9, %s5089_s25 }
 0xbb6   : > { %3777 = vrot.lane.b32.xlu1 %v4947_v52, %s5089_s25 }
 0xbb7   : > { %3775 = vrot.lane.b32.xlu0 %v4948_v60, %s5089_s25 }
 0xc18   : > { %v3671_v36 = vpop.permute.xlu1 %3670 }
 0xc19   : > { %v3669_v1 = vpop.permute.xlu0 %3668 }
 0xc1a   : > { %4634 = vmatprep.mubr.msk.bf16.mxu1 %vm822_vm14, %v3669_v1 }
 0xc1b   : > { %4635 = vmatmul.mubr.msk.bf16.vlgmr.msra.gmra.mrb[16].mxu1 %vm822_vm14, %v3671_v36 }
 0xc1c   : > { %v3754_v10 = vpop.permute.xlu1 %3753 }
 0xc1d   : > { %v3752_v62 = vpop.permute.xlu0 %3751 }
 0xc20   : > { %v3758_v53 = vpop.permute.xlu1 %3757 }
 0xc21   : > { %v3756_v3 = vpop.permute.xlu0 %3755 }
 0xc24   : > { %v3774_v59 = vpop.permute.xlu1 %3773 }
 0xc25   : > { %v3772_v47 = vpop.permute.xlu0 %3771 }
 0xc28   : > { %v3778_v17 = vpop.permute.xlu1 %3777 }
 0xc29   : > { %v3776_v33 = vpop.permute.xlu0 %3775 }
 0xcee   : > { %v4636_v16 = vpop.f32.mrb[16].mxu1 }
 0xcef   : > { %v3733_v37 = vadd.f32 %v4636_v16, %v4303_v8  ;;  %v3724_v5 = vpop.f32.mrb[17].mxu1 }
 0xcf0   : > { %v3725_v12 = vadd.f32 %v4303_v8, %v3724_v5  ;;  %v4637_v39 = vpop.f32.mrb[18].mxu1 }
 0xcf1   : > { %v3741_v26 = vmul.f32 %v3733_v37, %v5380_v27  ;;  %v3736_v11 = vadd.f32 %v4637_v39, %v4303_v8  ;;  %v3727_v44 = vpop.f32.mrb[19].mxu1 }
 0xcf2   : > { %v3739_v49 = vmul.f32 %v3725_v12, %v5371_v21  ;;  %v3728_v55 = vadd.f32 %v4303_v8, %v3727_v44 }
 0xcf3   : > { %v3765_v7 = vadd.f32 %v3756_v3, %v3741_v26  ;;  %v3742_v23 = vmul.f32 %v3736_v11, %v5388_v34  ;;  %3795 = sbr.rel (%p4308_p8) target bundleno = 3322 (0xcfa), region = 76 }
 0xcf4   : > { %v3763_v51 = vadd.f32 %v3752_v62, %v3739_v49  ;;  %v3740_v29 = vmul.f32 %v3728_v55, %v5373_v22 }
 0xcf5   : > { %v3766_v24 = vadd.f32 %v3758_v53, %v3742_v23  ;;  %v3785_v30 = vsel %vm614_vm4, %v3765_v7, %v3776_v33 }
 0xcf6   : > { %v3783_v25 = vsel %vm614_vm4, %v3763_v51, %v3772_v47  ;;  %v3764_v27 = vadd.f32 %v3754_v10, %v3740_v29  ;;  %3790 = vst.msk [vmem:[#allocation2 + $0x10] sm:$0xff] %vm3787_vm3, %v3785_v30  ;;  %3798 = vst.msk [vmem:[%s5336_s20 + $0x10] sm:$0xff] (!%p4308_p8), %vm3787_vm3, %v3785_v30 }
 0xcf7   : > { %3788 = vst.msk [vmem:[#allocation2] sm:$0xff] %vm3787_vm3, %v3783_v25  ;;  %v3786_v21 = vsel %vm614_vm4, %v3766_v24, %v3778_v17  ;;  %3796 = vst.msk [vmem:[%s5336_s20] sm:$0xff] (!%p4308_p8), %vm3787_vm3, %v3783_v25 }
 0xcf8   : > { %v3784_v13 = vsel %vm614_vm4, %v3764_v27, %v3774_v59  ;;  %3791 = vst.msk [vmem:[#allocation2 + $0x18] sm:$0xff] %vm3787_vm3, %v3786_v21  ;;  %3799 = vst.msk [vmem:[%s5336_s20 + $0x18] sm:$0xff] (!%p4308_p8), %vm3787_vm3, %v3786_v21 }
 0xcf9   : > { %3789 = vst.msk [vmem:[#allocation2 + $0x8] sm:$0xff] %vm3787_vm3, %v3784_v13  ;;  %3797 = vst.msk [vmem:[%s5336_s20 + $0x8] sm:$0xff] (!%p4308_p8), %vm3787_vm3, %v3784_v13 }
 0xcfa PF: > { %s6077_s22 = sld [smem:[#allocation14_spill]]  ;;  %s6078_s13 = sld [smem:[#allocation10_spill]] }
 0xcfb   : > { %s6079_s14 = sld [smem:[#allocation11_spill]]  ;;  %s6080_s15 = sld [smem:[#allocation17_spill]] }
 0xcfc   : > { %s6081_s16 = sld [smem:[#allocation12_spill]]  ;;  %s6082_s17 = sld [smem:[#allocation13_spill]] }
 0xcfd   : > { %s6083_s18 = sld [smem:[#allocation15_spill]]  ;;  %s6084_s19 = sld [smem:[#allocation16_spill]] }
 0xd00   : > { %s26_s20 = sadd.s32 1, %s6077_s22  }
 0xd01   : > { %p23_p2 = scmp.ge.s32.totalorder %s26_s20, 10  }
 0xd03   :  { %25 = sbr.rel (!%p23_p2) target bundleno = 10 (0xa), region = 173 }
 0xd0a   :  { %3822 = vsyncpa [#allocation5], 1 }
 0xd0b   :  { %3824 = vsyncpa [#allocation5 + $0x1], 1 }
 0xd0c   :  { %3825 = vsyncpa [#allocation7], 1 }
 0xd0d   :  { %3827 = vsyncpa [#allocation7 + $0x1], 1 }

</bundles_post_ra>
